<compile_context>
chip_gen: v7x
topology: tpu7x:2x2x1
jax: 0.10.0
libtpu: 0.0.40
codegen_flags: <defaults>
</compile_context>

<pallas_src>
import jax
import jax.numpy as jnp
from jax.experimental import pallas as pl
from jax.experimental.pallas import tpu as pltpu

N_EDGE_FEATURES = 3
N_NODE_FEATURES = 7
NODE_IN = 2 * N_NODE_FEATURES            # 14
INPUT_SIZE = NODE_IN + N_EDGE_FEATURES   # 17
HIDDEN = 100                             # logical hidden size
HPAD = 128                               # padded hidden size (lane-exact)
OPAD = 128                               # padded final-layer width (lane-dense store)
TM = 512                                 # rows (edges) per grid step


def _mlp_kernel(xn_ref, xe_ref,
                w1n_ref, w1e_ref, b1_ref,
                w2_ref, b2_ref,
                w3_ref, b3_ref,
                w4_ref, b4_ref,
                o_ref):
    # Inputs for this tile, cast once to bf16 for the MXU.
    xn = xn_ref[...].astype(jnp.bfloat16)          # [TM, 14]
    xe = xe_ref[...].astype(jnp.bfloat16)          # [TM, 3]

    # Layer 1: fused concat -> two partial dots, f32 accumulate, f32 bias.
    h = (jnp.dot(xn, w1n_ref[...], preferred_element_type=jnp.float32)
         + jnp.dot(xe, w1e_ref[...], preferred_element_type=jnp.float32)
         + b1_ref[...])
    h = jnp.maximum(h, 0.0).astype(jnp.bfloat16)   # ReLU, back to bf16 for MXU

    # Layer 2
    h = jnp.dot(h, w2_ref[...], preferred_element_type=jnp.float32) + b2_ref[...]
    h = jnp.maximum(h, 0.0).astype(jnp.bfloat16)

    # Layer 3
    h = jnp.dot(h, w3_ref[...], preferred_element_type=jnp.float32) + b3_ref[...]
    h = jnp.maximum(h, 0.0).astype(jnp.bfloat16)

    # Layer 4 (output padded to 128 lanes; only column 0 is the real logit)
    z = jnp.dot(h, w4_ref[...], preferred_element_type=jnp.float32) + b4_ref[...]

    # Sigmoid: exp on the EUP, approximate reciprocal on the EUP (no VPU divide).
    o_ref[...] = pl.reciprocal(1.0 + jnp.exp(-z), approx=True)


def init_params(key):
    """Deterministic Linear params at logical sizes; weights [in, out], biases [1, out]."""
    dims = [(INPUT_SIZE, HIDDEN), (HIDDEN, HIDDEN), (HIDDEN, HIDDEN), (HIDDEN, 1)]
    params = []
    for i, (din, dout) in enumerate(dims):
        kw, kb = jax.random.split(jax.random.fold_in(key, i))
        bound = 1.0 / (din ** 0.5)  # torch.nn.Linear default init range
        w = jax.random.uniform(kw, (din, dout), jnp.float32, -bound, bound)
        b = jax.random.uniform(kb, (1, dout), jnp.float32, -bound, bound)
        params += [w, b]
    return params


def prepare_params(params):
    """One-time: zero-pad hidden/output dims to 128, split W1 for the fused concat,
    cast weights to bf16 (biases stay f32 -- they are added after the f32 accumulate)."""
    w1, b1, w2, b2, w3, b3, w4, b4 = params

    def pad2d(a, rows, cols):
        out = jnp.zeros((rows, cols), jnp.float32)
        return out.at[:a.shape[0], :a.shape[1]].set(a)

    bf = jnp.bfloat16
    w1p = pad2d(w1, INPUT_SIZE, HPAD)
    return (
        w1p[:NODE_IN].astype(bf),            # w1_node [14, 128]
        w1p[NODE_IN:].astype(bf),            # w1_edge [3, 128]
        pad2d(b1, 1, HPAD),                  # b1 [1, 128] f32
        pad2d(w2, HPAD, HPAD).astype(bf),    # w2 [128, 128]
        pad2d(b2, 1, HPAD),
        pad2d(w3, HPAD, HPAD).astype(bf),    # w3 [128, 128]
        pad2d(b3, 1, HPAD),
        pad2d(w4, HPAD, OPAD).astype(bf),    # w4 [128, 128] (col 0 real)
        pad2d(b4, 1, OPAD),                  # b4 [1, 128]   (col 0 real)
    )


def deep_neural_network_forward(node_attr, edge_idxs, edge_attr, padded_params):
    # edge_idxs intentionally unused (same as the PyTorch module).
    del edge_idxs
    n = node_attr.shape[0]
    node_attr = node_attr.astype(jnp.float32)
    edge_attr = edge_attr.astype(jnp.float32)

    # Pad N to a multiple of the row tile so every grid step is a full block.
    n_steps = pl.cdiv(n, TM)
    n_pad = n_steps * TM
    if n_pad != n:
        node_attr = jnp.pad(node_attr, ((0, n_pad - n), (0, 0)))
        edge_attr = jnp.pad(edge_attr, ((0, n_pad - n), (0, 0)))

    row_spec = lambda i: (i, 0)     # tiled over N
    const_spec = lambda i: (0, 0)   # resident weights / biases

    in_specs = [
        pl.BlockSpec((TM, NODE_IN), row_spec),
        pl.BlockSpec((TM, N_EDGE_FEATURES), row_spec),
        pl.BlockSpec((NODE_IN, HPAD), const_spec),
        pl.BlockSpec((N_EDGE_FEATURES, HPAD), const_spec),
        pl.BlockSpec((1, HPAD), const_spec),
        pl.BlockSpec((HPAD, HPAD), const_spec),
        pl.BlockSpec((1, HPAD), const_spec),
        pl.BlockSpec((HPAD, HPAD), const_spec),
        pl.BlockSpec((1, HPAD), const_spec),
        pl.BlockSpec((HPAD, OPAD), const_spec),
        pl.BlockSpec((1, OPAD), const_spec),
    ]

    param_bytes = sum(int(p.size) * p.dtype.itemsize for p in padded_params)
    cost = pl.CostEstimate(
        flops=int(2 * n_pad * (INPUT_SIZE * HPAD + HPAD * HPAD + HPAD * HPAD + HPAD * OPAD)),
        transcendentals=int(n_pad * OPAD),
        bytes_accessed=int(n_pad * (NODE_IN + N_EDGE_FEATURES) * 4 + n_pad * OPAD * 4 + param_bytes),
    )

    # NOTE: the output is (n_pad, 128) f32 with the score in column 0; the
    # 128-wide lane-dense store avoids masked vst at the cost of a wider
    # (but pipelined/hidden) output DMA.
    out = pl.pallas_call(
        _mlp_kernel,
        out_shape=jax.ShapeDtypeStruct((n_pad, OPAD), jnp.float32),
        grid=(n_steps,),
        in_specs=in_specs,
        out_specs=pl.BlockSpec((TM, OPAD), row_spec),
        compiler_params=pltpu.CompilerParams(dimension_semantics=("parallel",)),
        cost_estimate=cost,
    )(node_attr, edge_attr, *padded_params)

    return out[:n, :1][:, None, :]   # slice real column + unsqueeze(1) -> [N, 1, 1]


def _reference_forward(node_attr, edge_attr, params):
    """Pure-JAX reference matching the kernel's numerics (bf16 matmul inputs, f32 accumulate)."""
    w1, b1, w2, b2, w3, b3, w4, b4 = params
    x = jnp.concatenate([node_attr, edge_attr], axis=1).astype(jnp.float32)

    def mm(a, w):
        return jnp.dot(a.astype(jnp.bfloat16), w.astype(jnp.bfloat16),
                       preferred_element_type=jnp.float32)

    h = jax.nn.relu(mm(x, w1) + b1)
    h = jax.nn.relu(mm(h, w2) + b2)
    h = jax.nn.relu(mm(h, w3) + b3)
    z = mm(h, w4) + b4
    return jax.nn.sigmoid(z)[:, None, :]


if __name__ == "__main__":
    key = jax.random.PRNGKey(0)
    k_node, k_edge, k_param = jax.random.split(key, 3)

    n_edges = 8
    node_attr = jax.random.normal(k_node, (n_edges, NODE_IN), jnp.float32)          # [8, 14]
    edge_attr = jax.random.normal(k_edge, (n_edges, N_EDGE_FEATURES), jnp.float32)  # [8, 3]
    edge_idxs = jnp.zeros((2, n_edges), jnp.int32)  # unused by forward

    params = init_params(k_param)
    padded_params = prepare_params(params)

    out = deep_neural_network_forward(node_attr, edge_idxs, edge_attr, padded_params)
    out = jax.block_until_ready(out)

    ref = _reference_forward(node_attr, edge_attr, params)
    assert out.shape == (n_edges, 1, 1), out.shape
    max_err = float(jnp.max(jnp.abs(out - ref)))
    assert max_err < 5e-3, (max_err, out, ref)

    print("KERNEL_OK")
</pallas_src>

<mosaic_0001>
module attributes {stable_mosaic.version = 11 : i64} {
  func.func @_mlp_kernel(%arg0: i32, %arg1: memref<512x14xf32, #tpu.memory_space<vmem>>, %arg2: memref<512x3xf32, #tpu.memory_space<vmem>>, %arg3: memref<14x128xbf16, #tpu.memory_space<vmem>>, %arg4: memref<3x128xbf16, #tpu.memory_space<vmem>>, %arg5: memref<1x128xf32, #tpu.memory_space<vmem>>, %arg6: memref<128x128xbf16, #tpu.memory_space<vmem>>, %arg7: memref<1x128xf32, #tpu.memory_space<vmem>>, %arg8: memref<128x128xbf16, #tpu.memory_space<vmem>>, %arg9: memref<1x128xf32, #tpu.memory_space<vmem>>, %arg10: memref<128x128xbf16, #tpu.memory_space<vmem>>, %arg11: memref<1x128xf32, #tpu.memory_space<vmem>>, %arg12: memref<512x128xf32, #tpu.memory_space<vmem>>) attributes {dimension_semantics = [#tpu.dimension_semantics<parallel>], iteration_bounds = array<i64: 1>, scalar_prefetch = 0 : i64, scratch_operands = 0 : i64, tpu.core_type = #tpu.core_type<tc>, window_params = [{transform_indices = @transform_0, window_bounds = array<i64: 512, 14>}, {transform_indices = @transform_1, window_bounds = array<i64: 512, 3>}, {pipeline_mode = #tpu.pipeline_mode<synchronous>, transform_indices = @transform_2, window_bounds = array<i64: 14, 128>}, {pipeline_mode = #tpu.pipeline_mode<synchronous>, transform_indices = @transform_3, window_bounds = array<i64: 3, 128>}, {pipeline_mode = #tpu.pipeline_mode<synchronous>, transform_indices = @transform_4, window_bounds = array<i64: 1, 128>}, {pipeline_mode = #tpu.pipeline_mode<synchronous>, transform_indices = @transform_5, window_bounds = array<i64: 128, 128>}, {pipeline_mode = #tpu.pipeline_mode<synchronous>, transform_indices = @transform_6, window_bounds = array<i64: 1, 128>}, {pipeline_mode = #tpu.pipeline_mode<synchronous>, transform_indices = @transform_7, window_bounds = array<i64: 128, 128>}, {pipeline_mode = #tpu.pipeline_mode<synchronous>, transform_indices = @transform_8, window_bounds = array<i64: 1, 128>}, {pipeline_mode = #tpu.pipeline_mode<synchronous>, transform_indices = @transform_9, window_bounds = array<i64: 128, 128>}, {pipeline_mode = #tpu.pipeline_mode<synchronous>, transform_indices = @transform_10, window_bounds = array<i64: 1, 128>}, {transform_indices = @transform_11, window_bounds = array<i64: 512, 128>}]} {
    %c0 = arith.constant 0 : index
    %c0_0 = arith.constant 0 : index
    %0 = vector.load %arg1[%c0, %c0_0] : memref<512x14xf32, #tpu.memory_space<vmem>>, vector<512x14xf32>
    %1 = arith.truncf %0 : vector<512x14xf32> to vector<512x14xbf16>
    %c0_1 = arith.constant 0 : index
    %c0_2 = arith.constant 0 : index
    %2 = vector.load %arg2[%c0_1, %c0_2] : memref<512x3xf32, #tpu.memory_space<vmem>>, vector<512x3xf32>
    %3 = arith.truncf %2 : vector<512x3xf32> to vector<512x3xbf16>
    %c0_3 = arith.constant 0 : index
    %c0_4 = arith.constant 0 : index
    %4 = vector.load %arg3[%c0_3, %c0_4] : memref<14x128xbf16, #tpu.memory_space<vmem>>, vector<14x128xbf16>
    %cst = arith.constant dense<0.000000e+00> : vector<512x128xf32>
    %5 = tpu.matmul %1, %4, %cst {dimension_numbers = #tpu.dot_dimension_numbers<[1], [0], [0], [1], [0, 0, 1, 1], [], []>} : vector<512x14xbf16>, vector<14x128xbf16>, vector<512x128xf32> -> vector<512x128xf32>
    %c0_5 = arith.constant 0 : index
    %c0_6 = arith.constant 0 : index
    %6 = vector.load %arg4[%c0_5, %c0_6] : memref<3x128xbf16, #tpu.memory_space<vmem>>, vector<3x128xbf16>
    %cst_7 = arith.constant dense<0.000000e+00> : vector<512x128xf32>
    %7 = tpu.matmul %3, %6, %cst_7 {dimension_numbers = #tpu.dot_dimension_numbers<[1], [0], [0], [1], [0, 0, 1, 1], [], []>} : vector<512x3xbf16>, vector<3x128xbf16>, vector<512x128xf32> -> vector<512x128xf32>
    %8 = arith.addf %5, %7 : vector<512x128xf32>
    %c0_8 = arith.constant 0 : index
    %c0_9 = arith.constant 0 : index
    %9 = vector.load %arg5[%c0_8, %c0_9] : memref<1x128xf32, #tpu.memory_space<vmem>>, vector<1x128xf32>
    %10 = vector.broadcast %9 : vector<1x128xf32> to vector<512x128xf32>
    %11 = arith.addf %8, %10 : vector<512x128xf32>
    %cst_10 = arith.constant 0.000000e+00 : f32
    %12 = vector.broadcast %cst_10 : f32 to vector<512x128xf32>
    %13 = arith.maximumf %11, %12 : vector<512x128xf32>
    %14 = arith.truncf %13 : vector<512x128xf32> to vector<512x128xbf16>
    %c0_11 = arith.constant 0 : index
    %c0_12 = arith.constant 0 : index
    %15 = vector.load %arg6[%c0_11, %c0_12] : memref<128x128xbf16, #tpu.memory_space<vmem>>, vector<128x128xbf16>
    %cst_13 = arith.constant dense<0.000000e+00> : vector<512x128xf32>
    %16 = tpu.matmul %14, %15, %cst_13 {dimension_numbers = #tpu.dot_dimension_numbers<[1], [0], [0], [1], [0, 0, 1, 1], [], []>} : vector<512x128xbf16>, vector<128x128xbf16>, vector<512x128xf32> -> vector<512x128xf32>
    %c0_14 = arith.constant 0 : index
    %c0_15 = arith.constant 0 : index
    %17 = vector.load %arg7[%c0_14, %c0_15] : memref<1x128xf32, #tpu.memory_space<vmem>>, vector<1x128xf32>
    %18 = vector.broadcast %17 : vector<1x128xf32> to vector<512x128xf32>
    %19 = arith.addf %16, %18 : vector<512x128xf32>
    %cst_16 = arith.constant 0.000000e+00 : f32
    %20 = vector.broadcast %cst_16 : f32 to vector<512x128xf32>
    %21 = arith.maximumf %19, %20 : vector<512x128xf32>
    %22 = arith.truncf %21 : vector<512x128xf32> to vector<512x128xbf16>
    %c0_17 = arith.constant 0 : index
    %c0_18 = arith.constant 0 : index
    %23 = vector.load %arg8[%c0_17, %c0_18] : memref<128x128xbf16, #tpu.memory_space<vmem>>, vector<128x128xbf16>
    %cst_19 = arith.constant dense<0.000000e+00> : vector<512x128xf32>
    %24 = tpu.matmul %22, %23, %cst_19 {dimension_numbers = #tpu.dot_dimension_numbers<[1], [0], [0], [1], [0, 0, 1, 1], [], []>} : vector<512x128xbf16>, vector<128x128xbf16>, vector<512x128xf32> -> vector<512x128xf32>
    %c0_20 = arith.constant 0 : index
    %c0_21 = arith.constant 0 : index
    %25 = vector.load %arg9[%c0_20, %c0_21] : memref<1x128xf32, #tpu.memory_space<vmem>>, vector<1x128xf32>
    %26 = vector.broadcast %25 : vector<1x128xf32> to vector<512x128xf32>
    %27 = arith.addf %24, %26 : vector<512x128xf32>
    %cst_22 = arith.constant 0.000000e+00 : f32
    %28 = vector.broadcast %cst_22 : f32 to vector<512x128xf32>
    %29 = arith.maximumf %27, %28 : vector<512x128xf32>
    %30 = arith.truncf %29 : vector<512x128xf32> to vector<512x128xbf16>
    %c0_23 = arith.constant 0 : index
    %c0_24 = arith.constant 0 : index
    %31 = vector.load %arg10[%c0_23, %c0_24] : memref<128x128xbf16, #tpu.memory_space<vmem>>, vector<128x128xbf16>
    %cst_25 = arith.constant dense<0.000000e+00> : vector<512x128xf32>
    %32 = tpu.matmul %30, %31, %cst_25 {dimension_numbers = #tpu.dot_dimension_numbers<[1], [0], [0], [1], [0, 0, 1, 1], [], []>} : vector<512x128xbf16>, vector<128x128xbf16>, vector<512x128xf32> -> vector<512x128xf32>
    %c0_26 = arith.constant 0 : index
    %c0_27 = arith.constant 0 : index
    %33 = vector.load %arg11[%c0_26, %c0_27] : memref<1x128xf32, #tpu.memory_space<vmem>>, vector<1x128xf32>
    %34 = vector.broadcast %33 : vector<1x128xf32> to vector<512x128xf32>
    %35 = arith.addf %32, %34 : vector<512x128xf32>
    %cst_28 = arith.constant 0.000000e+00 : f32
    %36 = vector.broadcast %cst_28 : f32 to vector<512x128xf32>
    %37 = arith.subf %36, %35 : vector<512x128xf32>
    %38 = math.exp %37 : vector<512x128xf32>
    %cst_29 = arith.constant 1.000000e+00 : f32
    %39 = vector.broadcast %cst_29 : f32 to vector<512x128xf32>
    %40 = arith.addf %39, %38 : vector<512x128xf32>
    %41 = tpu.reciprocal %40 {approx = true} : vector<512x128xf32> -> vector<512x128xf32>
    %c0_30 = arith.constant 0 : index
    %c0_31 = arith.constant 0 : index
    %42 = vector.load %arg12[%c0_30, %c0_31] : memref<512x128xf32, #tpu.memory_space<vmem>>, vector<512x128xf32>
    tpu.vector_store %arg12[%c0_30, %c0_31], %41 {strides = array<i32>} : memref<512x128xf32, #tpu.memory_space<vmem>>, vector<512x128xf32>,
    return
  }
  func.func @transform_0(%arg0: i32) -> (i32, i32) {
    %c0_i32 = arith.constant 0 : i32
    %c0_i32_0 = arith.constant 0 : i32
    return %arg0, %c0_i32 : i32, i32
  }
  func.func @transform_1(%arg0: i32) -> (i32, i32) {
    %c0_i32 = arith.constant 0 : i32
    %c0_i32_0 = arith.constant 0 : i32
    return %arg0, %c0_i32 : i32, i32
  }
  func.func @transform_2(%arg0: i32) -> (i32, i32) {
    %c0_i32 = arith.constant 0 : i32
    %c0_i32_0 = arith.constant 0 : i32
    %c0_i32_1 = arith.constant 0 : i32
    return %c0_i32, %c0_i32_0 : i32, i32
  }
  func.func @transform_3(%arg0: i32) -> (i32, i32) {
    %c0_i32 = arith.constant 0 : i32
    %c0_i32_0 = arith.constant 0 : i32
    %c0_i32_1 = arith.constant 0 : i32
    return %c0_i32, %c0_i32_0 : i32, i32
  }
  func.func @transform_4(%arg0: i32) -> (i32, i32) {
    %c0_i32 = arith.constant 0 : i32
    %c0_i32_0 = arith.constant 0 : i32
    %c0_i32_1 = arith.constant 0 : i32
    return %c0_i32, %c0_i32_0 : i32, i32
  }
  func.func @transform_5(%arg0: i32) -> (i32, i32) {
    %c0_i32 = arith.constant 0 : i32
    %c0_i32_0 = arith.constant 0 : i32
    %c0_i32_1 = arith.constant 0 : i32
    return %c0_i32, %c0_i32_0 : i32, i32
  }
  func.func @transform_6(%arg0: i32) -> (i32, i32) {
    %c0_i32 = arith.constant 0 : i32
    %c0_i32_0 = arith.constant 0 : i32
    %c0_i32_1 = arith.constant 0 : i32
    return %c0_i32, %c0_i32_0 : i32, i32
  }
  func.func @transform_7(%arg0: i32) -> (i32, i32) {
    %c0_i32 = arith.constant 0 : i32
    %c0_i32_0 = arith.constant 0 : i32
    %c0_i32_1 = arith.constant 0 : i32
    return %c0_i32, %c0_i32_0 : i32, i32
  }
  func.func @transform_8(%arg0: i32) -> (i32, i32) {
    %c0_i32 = arith.constant 0 : i32
    %c0_i32_0 = arith.constant 0 : i32
    %c0_i32_1 = arith.constant 0 : i32
    return %c0_i32, %c0_i32_0 : i32, i32
  }
  func.func @transform_9(%arg0: i32) -> (i32, i32) {
    %c0_i32 = arith.constant 0 : i32
    %c0_i32_0 = arith.constant 0 : i32
    %c0_i32_1 = arith.constant 0 : i32
    return %c0_i32, %c0_i32_0 : i32, i32
  }
  func.func @transform_10(%arg0: i32) -> (i32, i32) {
    %c0_i32 = arith.constant 0 : i32
    %c0_i32_0 = arith.constant 0 : i32
    %c0_i32_1 = arith.constant 0 : i32
    return %c0_i32, %c0_i32_0 : i32, i32
  }
  func.func @transform_11(%arg0: i32) -> (i32, i32) {
    %c0_i32 = arith.constant 0 : i32
    %c0_i32_0 = arith.constant 0 : i32
    return %arg0, %c0_i32 : i32, i32
  }
}

</mosaic_0001>

<bundles_post_ra>
// kernel: tpu_custom_call.1
= control target key start
LH: loop header
LB: loop body
LE: loop exit
PB: predicated region body
PF: predicated region fallthrough
CT: control target
= control target key end

     0   :  { %vm332_vm0 = vcmask 1040384   ;;  %vm333_vm1 = vcmask 1041408   ;;  %v3890_v2 = vmov 65535   ;;  %vm235_vm2 = vcmask 23552   ;;  %s4861_s0 = inlined_call_operand.vmem [shape: f32[512,14], index: 0, kind: input, shape index: {}]   ;;  %s4862_s1 = inlined_call_operand.vmem [shape: f32[512,3], index: 1, kind: input, shape index: {}]   ;;  %s4863_s2 = inlined_call_operand.vmem [shape: bf16[14,128], index: 2, kind: input, shape index: {}]   ;;  %s4864_s3 = inlined_call_operand.vmem [shape: bf16[3,128], index: 3, kind: input, shape index: {}]   ;;  %s4865_s4 = inlined_call_operand.vmem [shape: f32[1,128], index: 4, kind: input, shape index: {}]   ;;  %s4866_s5 = inlined_call_operand.vmem [shape: bf16[128,128], index: 5, kind: input, shape index: {}]   ;;  %s4867_s6 = inlined_call_operand.vmem [shape: f32[1,128], index: 6, kind: input, shape index: {}]   ;;  %s4868_s7 = inlined_call_operand.vmem [shape: bf16[128,128], index: 7, kind: input, shape index: {}]   ;;  %s4869_s8 = inlined_call_operand.vmem [shape: f32[1,128], index: 8, kind: input, shape index: {}]   ;;  %s4870_s9 = inlined_call_operand.vmem [shape: bf16[128,128], index: 9, kind: input, shape index: {}]   ;;  %s4871_s10 = inlined_call_operand.vmem [shape: f32[1,128], index: 10, kind: input, shape index: {}]   ;;  %s4872_s11 = inlined_call_operand.hbm [shape: f32[512,128], index: 11, kind: output, shape index: {}]  }
   0x1   :  { %v234_v0 = vld [vmem:[%s4864_s3] sm:$0x3]  ;;  %v334_v3 = vsel %vm332_vm0, 4294967295, %v3890_v2  ;;  %v137_v4 = vld [vmem:[%s4862_s1 + $0x8] sm:$0xff]  ;;  %v138_v5 = vld [vmem:[%s4862_s1 + $0x10] sm:$0xff]  ;;  %vm730_vm3 = vcmask 1046528  }
   0x2   :  { %v136_v1 = vld [vmem:[%s4862_s1] sm:$0xff]  ;;  %v335_v6 = vsel %vm333_vm1, %v334_v3, 0  ;;  %v139_v8 = vld [vmem:[%s4862_s1 + $0x18] sm:$0xff]  ;;  %v141_v12 = vld [vmem:[%s4862_s1 + $0x28] sm:$0xff] }
   0x3   :  { %v200_v7 = vpack.c.bf16 %v137_v4, %v136_v1  ;;  %v337_v9 = vand.u32 %v335_v6, %v234_v0  ;;  %v3584_v10 = vld [vmem:[%s4863_s2] sm:$0x7f]   ;;  %v201_v13 = vpack.c.bf16 %v139_v8, %v138_v5  ;;  %v142_v16 = vld [vmem:[%s4862_s1 + $0x30] sm:$0xff]  ;;  %v143_v17 = vld [vmem:[%s4862_s1 + $0x38] sm:$0xff] }
   0x4   :  { %v140_v11 = vld [vmem:[%s4862_s1 + $0x20] sm:$0xff]  ;;  %v732_v15 = vsel %vm730_vm3, %v3584_v10, 0  ;;  %v145_v19 = vld [vmem:[%s4862_s1 + $0x48] sm:$0xff]  ;;  %v203_v20 = vpack.c.bf16 %v143_v17, %v142_v16  ;;  %v146_v22 = vld [vmem:[%s4862_s1 + $0x50] sm:$0xff] }
   0x5   :  { %3143 = vmatprep.mubr.msk.bf16.mxu0 %vm235_vm2, %v200_v7  ;;  %3141 = vmatprep.subr.bf16.mxu0 %v337_v9  ;;  %v202_v14 = vpack.c.bf16 %v141_v12, %v140_v11  ;;  %v144_v18 = vld [vmem:[%s4862_s1 + $0x40] sm:$0xff]  ;;  %v147_v23 = vld [vmem:[%s4862_s1 + $0x58] sm:$0xff]  ;;  %v149_v25 = vld [vmem:[%s4862_s1 + $0x68] sm:$0xff] }
   0x6   :  { %3513 = vmatprep.subr.bf16.mxu1 %v337_v9  ;;  %3142 = vmatpush3.bf16.msra.mxu0 %v337_v9  ;;  %v204_v21 = vpack.c.bf16 %v145_v19, %v144_v18  ;;  %v148_v24 = vld [vmem:[%s4862_s1 + $0x60] sm:$0xff]  ;;  %v205_v26 = vpack.c.bf16 %v147_v23, %v146_v22  ;;  %v169_v29 = vld [vmem:[%s4862_s1 + $0x108] sm:$0xff]  ;;  %v170_v30 = vld [vmem:[%s4862_s1 + $0x110] sm:$0xff] }
   0x7   :  { %3514 = vmatpush3.bf16.msra.mxu1 %v337_v9  ;;  %3579 = vmatprep.subr.msk.bf16.mxu0 %vm730_vm3, %v3584_v10  ;;  %v206_v27 = vpack.c.bf16 %v149_v25, %v148_v24  ;;  %v168_v28 = vld [vmem:[%s4862_s1 + $0x100] sm:$0xff]  ;;  %v171_v32 = vld [vmem:[%s4862_s1 + $0x118] sm:$0xff]  ;;  %v150_v35 = vld [vmem:[%s4862_s1 + $0x70] sm:$0xff] }
   0x8   :  { %v216_v31 = vpack.c.bf16 %v169_v29, %v168_v28  ;;  %v217_v33 = vpack.c.bf16 %v171_v32, %v170_v30  ;;  %v172_v34 = vld [vmem:[%s4862_s1 + $0x120] sm:$0xff]  ;;  %v151_v36 = vld [vmem:[%s4862_s1 + $0x78] sm:$0xff]  ;;  %v173_v37 = vld [vmem:[%s4862_s1 + $0x128] sm:$0xff] }
   0x9   :  { %3144 = vmatmul.mubr.msk.bf16.vlgmr.msra.gmra.mrb[0].mxu0 %vm235_vm2, %v201_v13  ;;  %v152_v38 = vld [vmem:[%s4862_s1 + $0x80] sm:$0xff]  ;;  %v153_v39 = vld [vmem:[%s4862_s1 + $0x88] sm:$0xff]  ;;  %v218_v40 = vpack.c.bf16 %v173_v37, %v172_v34  ;;  %v174_v41 = vld [vmem:[%s4862_s1 + $0x130] sm:$0xff]  ;;  %v207_v43 = vpack.c.bf16 %v151_v36, %v150_v35 }
   0xa   :  { %3208 = vmatpush3.bf16.msra.mxu0 %v732_v15  ;;  %3147 = vmatprep.mubr.msk.bf16.mxu0 %vm235_vm2, %v202_v14  ;;  %v175_v42 = vld [vmem:[%s4862_s1 + $0x138] sm:$0xff]  ;;  %v176_v44 = vld [vmem:[%s4862_s1 + $0x140] sm:$0xff]  ;;  %v177_v45 = vld [vmem:[%s4862_s1 + $0x148] sm:$0xff]  ;;  %v208_v46 = vpack.c.bf16 %v153_v39, %v152_v38 }
   0xb   :  { %3175 = vmatprep.mubr.msk.bf16.mxu1 %vm235_vm2, %v216_v31  ;;  %v219_v47 = vpack.c.bf16 %v175_v42, %v174_v41  ;;  %v220_v48 = vpack.c.bf16 %v177_v45, %v176_v44  ;;  %v154_v49 = vld [vmem:[%s4862_s1 + $0x90] sm:$0xff]  ;;  %v155_v50 = vld [vmem:[%s4862_s1 + $0x98] sm:$0xff]  ;;  %v156_v51 = vld [vmem:[%s4862_s1 + $0xa0] sm:$0xff] }
   0xc   :  { %3176 = vmatmul.mubr.msk.bf16.vlgmr.msra.gmra.mrb[0].mxu1 %vm235_vm2, %v217_v33  ;;  %v157_v52 = vld [vmem:[%s4862_s1 + $0xa8] sm:$0xff]  ;;  %v178_v53 = vld [vmem:[%s4862_s1 + $0x150] sm:$0xff]  ;;  %v179_v54 = vld [vmem:[%s4862_s1 + $0x158] sm:$0xff]  ;;  %v209_v57 = vpack.c.bf16 %v155_v50, %v154_v49 }
   0xd   :  { %3179 = vmatprep.mubr.msk.bf16.mxu1 %vm235_vm2, %v218_v40  ;;  %v180_v55 = vld [vmem:[%s4862_s1 + $0x160] sm:$0xff]  ;;  %v181_v56 = vld [vmem:[%s4862_s1 + $0x168] sm:$0xff]  ;;  %v210_v58 = vpack.c.bf16 %v157_v52, %v156_v51  ;;  %v221_v59 = vpack.c.bf16 %v179_v54, %v178_v53  ;;  %v158_v61 = vld [vmem:[%s4862_s1 + $0xb0] sm:$0xff] }
   0xe   :  { %v222_v60 = vpack.c.bf16 %v181_v56, %v180_v55  ;;  %v159_v62 = vld [vmem:[%s4862_s1 + $0xb8] sm:$0xff]  ;;  %v160_v63 = vld [vmem:[%s4862_s1 + $0xc0] sm:$0xff]  ;;  %v161_v0 = vld [vmem:[%s4862_s1 + $0xc8] sm:$0xff] }
   0xf   :  { %v182_v1 = vld [vmem:[%s4862_s1 + $0x170] sm:$0xff]  ;;  %v183_v2 = vld [vmem:[%s4862_s1 + $0x178] sm:$0xff]  ;;  %v184_v3 = vld [vmem:[%s4862_s1 + $0x180] sm:$0xff]  ;;  %v211_v5 = vpack.c.bf16 %v159_v62, %v158_v61  ;;  %v212_v6 = vpack.c.bf16 %v161_v0, %v160_v63 }
  0x10   :  { %v185_v4 = vld [vmem:[%s4862_s1 + $0x188] sm:$0xff]  ;;  %v223_v7 = vpack.c.bf16 %v183_v2, %v182_v1  ;;  %v162_v9 = vld [vmem:[%s4862_s1 + $0xd0] sm:$0xff]  ;;  %v163_v10 = vld [vmem:[%s4862_s1 + $0xd8] sm:$0xff] }
  0x11   :  { %3148 = vmatmul.mubr.msk.bf16.gmra.mrb[4].mxu0 %vm235_vm2, %v203_v20  ;;  %v224_v8 = vpack.c.bf16 %v185_v4, %v184_v3  ;;  %v164_v11 = vld [vmem:[%s4862_s1 + $0xe0] sm:$0xff]  ;;  %v165_v12 = vld [vmem:[%s4862_s1 + $0xe8] sm:$0xff]  ;;  %v186_v13 = vld [vmem:[%s4862_s1 + $0x190] sm:$0xff]  ;;  %v213_v17 = vpack.c.bf16 %v163_v10, %v162_v9 }
  0x12   :  { %3151 = vmatprep.mubr.msk.bf16.mxu0 %vm235_vm2, %v204_v21  ;;  %v187_v14 = vld [vmem:[%s4862_s1 + $0x198] sm:$0xff]  ;;  %v188_v15 = vld [vmem:[%s4862_s1 + $0x1a0] sm:$0xff]  ;;  %v189_v16 = vld [vmem:[%s4862_s1 + $0x1a8] sm:$0xff]  ;;  %v214_v18 = vpack.c.bf16 %v165_v12, %v164_v11 }
  0x13   :  { %v225_v19 = vpack.c.bf16 %v187_v14, %v186_v13  ;;  %v226_v20 = vpack.c.bf16 %v189_v16, %v188_v15  ;;  %v166_v21 = vld [vmem:[%s4862_s1 + $0xf0] sm:$0xff]  ;;  %v167_v22 = vld [vmem:[%s4862_s1 + $0xf8] sm:$0xff]  ;;  %v40_v23 = vld [vmem:[%s4861_s0] sm:$0xff] }
  0x14   :  { %3180 = vmatmul.mubr.msk.bf16.gmra.mrb[4].mxu1 %vm235_vm2, %v219_v47  ;;  %v41_v24 = vld [vmem:[%s4861_s0 + $0x8] sm:$0xff]  ;;  %v190_v25 = vld [vmem:[%s4862_s1 + $0x1b0] sm:$0xff] }
  0x15   :  { %3183 = vmatprep.mubr.msk.bf16.mxu1 %vm235_vm2, %v220_v48 }
  0x19   :  { %3152 = vmatmul.mubr.msk.bf16.gmra.mrb[8].mxu0 %vm235_vm2, %v205_v26  ;;  %v191_v26 = vld [vmem:[%s4862_s1 + $0x1b8] sm:$0xff] }
  0x1a   :  { %3155 = vmatprep.mubr.msk.bf16.mxu0 %vm235_vm2, %v206_v27 }
  0x1c   :  { %3184 = vmatmul.mubr.msk.bf16.gmra.mrb[8].mxu1 %vm235_vm2, %v221_v59 }
  0x1d   :  { %3187 = vmatprep.mubr.msk.bf16.mxu1 %vm235_vm2, %v222_v60 }
  0x21   :  { %3156 = vmatmul.mubr.msk.bf16.gmra.mrb[12].mxu0 %vm235_vm2, %v207_v43 }
  0x22   :  { %3159 = vmatprep.mubr.msk.bf16.mxu0 %vm235_vm2, %v208_v46 }
  0x24   :  { %3188 = vmatmul.mubr.msk.bf16.gmra.mrb[12].mxu1 %vm235_vm2, %v223_v7 }
  0x25   :  { %3191 = vmatprep.mubr.msk.bf16.mxu1 %vm235_vm2, %v224_v8 }
  0x29   :  { %3160 = vmatmul.mubr.msk.bf16.gmra.mrb[16].mxu0 %vm235_vm2, %v209_v57 }
  0x2a   :  { %3163 = vmatprep.mubr.msk.bf16.mxu0 %vm235_vm2, %v210_v58 }
  0x2c   :  { %3192 = vmatmul.mubr.msk.bf16.gmra.mrb[16].mxu1 %vm235_vm2, %v225_v19 }
  0x2d   :  { %3195 = vmatprep.mubr.msk.bf16.mxu1 %vm235_vm2, %v226_v20 }
  0x31   :  { %3164 = vmatmul.mubr.msk.bf16.gmra.mrb[20].mxu0 %vm235_vm2, %v211_v5 }
  0x32   :  { %3167 = vmatprep.mubr.msk.bf16.mxu0 %vm235_vm2, %v212_v6 }
  0x39   :  { %3168 = vmatmul.mubr.msk.bf16.gmra.mrb[24].mxu0 %vm235_vm2, %v213_v17 }
  0x3a   :  { %3171 = vmatprep.mubr.msk.bf16.mxu0 %vm235_vm2, %v214_v18 }
  0x3b   :  { %16 = vsyncpa [#allocation3], 0  ;;  %v215_v27 = vpack.c.bf16 %v167_v22, %v166_v21  ;;  %v192_v28 = vld [vmem:[%s4862_s1 + $0x1c0] sm:$0xff]  ;;  %v193_v29 = vld [vmem:[%s4862_s1 + $0x1c8] sm:$0xff]  ;;  %v104_v30 = vpack.c.bf16 %v41_v24, %v40_v23  ;;  %vm633_vm4 = vcmask 113664   ;;  %v227_v31 = vpack.c.bf16 %v191_v26, %v190_v25 }
  0x3c   :  { %v228_v32 = vpack.c.bf16 %v193_v29, %v192_v28  ;;  %v3585_v33 = vld [vmem:[%s4866_s5] sm:$0xff]   ;;  %v3586_v34 = vld [vmem:[%s4866_s5 + $0x8] sm:$0xff]   ;;  %v42_v35 = vld [vmem:[%s4861_s0 + $0x10] sm:$0xff] }
  0x3d   :  { %v43_v36 = vld [vmem:[%s4861_s0 + $0x18] sm:$0xff]  ;;  %v44_v37 = vld [vmem:[%s4861_s0 + $0x20] sm:$0xff]  ;;  %v45_v38 = vld [vmem:[%s4861_s0 + $0x28] sm:$0xff]  ;;  %3196 = vmatmul.mubr.msk.bf16.gmra.mrb[20].mxu1 %vm235_vm2, %v227_v31  ;;  %3273 = vmatprep.subr.bf16.mxu1 %v3585_v33 }
  0x3e   :  { %3199 = vmatprep.mubr.msk.bf16.mxu1 %vm235_vm2, %v228_v32  ;;  %v194_v39 = vld [vmem:[%s4862_s1 + $0x1d0] sm:$0xff]  ;;  %v195_v40 = vld [vmem:[%s4862_s1 + $0x1d8] sm:$0xff]  ;;  %3274 = vmatpush3.bf16.msra.mxu1 %v3585_v33  ;;  %v105_v41 = vpack.c.bf16 %v43_v36, %v42_v35  ;;  %v196_v42 = vld [vmem:[%s4862_s1 + $0x1e0] sm:$0xff]  ;;  %v106_v45 = vpack.c.bf16 %v45_v38, %v44_v37 }
  0x3f   :  { %v197_v43 = vld [vmem:[%s4862_s1 + $0x1e8] sm:$0xff]  ;;  %3275 = vmatprep.subr.bf16.mxu1 %v3586_v34  ;;  %v3587_v44 = vld [vmem:[%s4866_s5 + $0x10] sm:$0xff]   ;;  %v229_v46 = vpack.c.bf16 %v195_v40, %v194_v39  ;;  %v3588_v48 = vld [vmem:[%s4866_s5 + $0x18] sm:$0xff]  }
  0x40   :  { %v230_v47 = vpack.c.bf16 %v197_v43, %v196_v42  ;;  %v46_v49 = vld [vmem:[%s4861_s0 + $0x30] sm:$0xff]  ;;  %v47_v50 = vld [vmem:[%s4861_s0 + $0x38] sm:$0xff]  ;;  %v48_v51 = vld [vmem:[%s4861_s0 + $0x40] sm:$0xff] }
  0x41   :  { %3172 = vmatmul.mubr.msk.bf16.gmra.mrb[28].mxu0 %vm235_vm2, %v215_v27  ;;  %v49_v52 = vld [vmem:[%s4861_s0 + $0x48] sm:$0xff]  ;;  %v198_v53 = vld [vmem:[%s4862_s1 + $0x1f0] sm:$0xff]  ;;  %v199_v54 = vld [vmem:[%s4862_s1 + $0x1f8] sm:$0xff]  ;;  %v107_v55 = vpack.c.bf16 %v47_v50, %v46_v49 }
  0x42   :  { %3209 = vmatprep.mubr.msk.bf16.mxu0 %vm633_vm4, %v104_v30  ;;  %3276 = vmatpush3.bf16.msra.mxu1 %v3586_v34  ;;  %v3589_v56 = vld [vmem:[%s4866_s5 + $0x20] sm:$0xff]   ;;  %v108_v57 = vpack.c.bf16 %v49_v52, %v48_v51  ;;  %v231_v58 = vpack.c.bf16 %v199_v54, %v198_v53  ;;  %v3590_v59 = vld [vmem:[%s4866_s5 + $0x28] sm:$0xff]   ;;  %v50_v60 = vld [vmem:[%s4861_s0 + $0x50] sm:$0xff] }
  0x43   :  { %3277 = vmatprep.subr.bf16.mxu1 %v3587_v44  ;;  %v51_v61 = vld [vmem:[%s4861_s0 + $0x58] sm:$0xff]  ;;  %v52_v62 = vld [vmem:[%s4861_s0 + $0x60] sm:$0xff]  ;;  %v53_v63 = vld [vmem:[%s4861_s0 + $0x68] sm:$0xff] }
  0x44   :  { %v109_v0 = vpack.c.bf16 %v51_v61, %v50_v60  ;;  %v3591_v1 = vld [vmem:[%s4866_s5 + $0x30] sm:$0xff]   ;;  %v110_v2 = vpack.c.bf16 %v53_v63, %v52_v62  ;;  %v55_v4 = vld [vmem:[%s4861_s0 + $0x78] sm:$0xff]  ;;  %v56_v5 = vld [vmem:[%s4861_s0 + $0x80] sm:$0xff] }
  0x45   :  { %3200 = vmatmul.mubr.msk.bf16.gmra.mrb[24].mxu1 %vm235_vm2, %v229_v46  ;;  %v54_v3 = vld [vmem:[%s4861_s0 + $0x70] sm:$0xff]  ;;  %v57_v6 = vld [vmem:[%s4861_s0 + $0x88] sm:$0xff]  ;;  %v59_v10 = vld [vmem:[%s4861_s0 + $0x98] sm:$0xff] }
  0x46   :  { %3203 = vmatprep.mubr.msk.bf16.mxu1 %vm235_vm2, %v230_v47  ;;  %3278 = vmatpush3.bf16.msra.mxu1 %v3587_v44  ;;  %v111_v7 = vpack.c.bf16 %v55_v4, %v54_v3  ;;  %v112_v8 = vpack.c.bf16 %v57_v6, %v56_v5  ;;  %v58_v9 = vld [vmem:[%s4861_s0 + $0x90] sm:$0xff]  ;;  %v60_v11 = vld [vmem:[%s4861_s0 + $0xa0] sm:$0xff]  ;;  %v61_v12 = vld [vmem:[%s4861_s0 + $0xa8] sm:$0xff] }
  0x47   :  { %3279 = vmatprep.subr.bf16.mxu1 %v3588_v48  ;;  %v113_v13 = vpack.c.bf16 %v59_v10, %v58_v9  ;;  %v114_v14 = vpack.c.bf16 %v61_v12, %v60_v11  ;;  %v62_v15 = vld [vmem:[%s4861_s0 + $0xb0] sm:$0xff]  ;;  %v63_v16 = vld [vmem:[%s4861_s0 + $0xb8] sm:$0xff]  ;;  %v64_v17 = vld [vmem:[%s4861_s0 + $0xc0] sm:$0xff] }
  0x48   :  { %v65_v18 = vld [vmem:[%s4861_s0 + $0xc8] sm:$0xff]  ;;  %v115_v19 = vpack.c.bf16 %v63_v16, %v62_v15  ;;  %v66_v21 = vld [vmem:[%s4861_s0 + $0xd0] sm:$0xff]  ;;  %v67_v22 = vld [vmem:[%s4861_s0 + $0xd8] sm:$0xff] }
  0x49   :  { %3210 = vmatmul.mubr.msk.bf16.vlgmr.msra.gmra.mrb[0].mxu0 %vm633_vm4, %v105_v41  ;;  %v116_v20 = vpack.c.bf16 %v65_v18, %v64_v17  ;;  %v68_v23 = vld [vmem:[%s4861_s0 + $0xe0] sm:$0xff]  ;;  %v69_v24 = vld [vmem:[%s4861_s0 + $0xe8] sm:$0xff]  ;;  %v117_v25 = vpack.c.bf16 %v67_v22, %v66_v21  ;;  %v70_v27 = vld [vmem:[%s4861_s0 + $0xf0] sm:$0xff] }
  0x4a   :  { %3213 = vmatprep.mubr.msk.bf16.mxu0 %vm633_vm4, %v106_v45  ;;  %3280 = vmatpush3.bf16.msra.mxu1 %v3588_v48  ;;  %v118_v26 = vpack.c.bf16 %v69_v24, %v68_v23  ;;  %v71_v28 = vld [vmem:[%s4861_s0 + $0xf8] sm:$0xff]  ;;  %v72_v29 = vld [vmem:[%s4861_s0 + $0x100] sm:$0xff]  ;;  %v73_v30 = vld [vmem:[%s4861_s0 + $0x108] sm:$0xff] }
  0x4b   :  { %3281 = vmatprep.subr.bf16.mxu1 %v3589_v56  ;;  %v119_v31 = vpack.c.bf16 %v71_v28, %v70_v27  ;;  %v120_v32 = vpack.c.bf16 %v73_v30, %v72_v29  ;;  %v74_v33 = vld [vmem:[%s4861_s0 + $0x110] sm:$0xff]  ;;  %v75_v34 = vld [vmem:[%s4861_s0 + $0x118] sm:$0xff]  ;;  %v76_v35 = vld [vmem:[%s4861_s0 + $0x120] sm:$0xff] }
  0x4c   :  { %v77_v36 = vld [vmem:[%s4861_s0 + $0x128] sm:$0xff]  ;;  %v121_v37 = vpack.c.bf16 %v75_v34, %v74_v33  ;;  %v78_v39 = vld [vmem:[%s4861_s0 + $0x130] sm:$0xff]  ;;  %v79_v40 = vld [vmem:[%s4861_s0 + $0x138] sm:$0xff] }
  0x4d   :  { %3204 = vmatmul.mubr.msk.bf16.gmra.mrb[28].mxu1 %vm235_vm2, %v231_v58  ;;  %v122_v38 = vpack.c.bf16 %v77_v36, %v76_v35  ;;  %v80_v41 = vld [vmem:[%s4861_s0 + $0x140] sm:$0xff]  ;;  %v81_v42 = vld [vmem:[%s4861_s0 + $0x148] sm:$0xff]  ;;  %v123_v43 = vpack.c.bf16 %v79_v40, %v78_v39  ;;  %v82_v45 = vld [vmem:[%s4861_s0 + $0x150] sm:$0xff] }
  0x4e   :  { %3282 = vmatpush3.bf16.msra.mxu1 %v3589_v56  ;;  %v124_v44 = vpack.c.bf16 %v81_v42, %v80_v41  ;;  %v83_v46 = vld [vmem:[%s4861_s0 + $0x158] sm:$0xff]  ;;  %v84_v47 = vld [vmem:[%s4861_s0 + $0x160] sm:$0xff]  ;;  %v85_v48 = vld [vmem:[%s4861_s0 + $0x168] sm:$0xff] }
  0x4f   :  { %3283 = vmatprep.subr.bf16.mxu1 %v3590_v59  ;;  %v125_v49 = vpack.c.bf16 %v83_v46, %v82_v45  ;;  %v126_v50 = vpack.c.bf16 %v85_v48, %v84_v47  ;;  %v86_v51 = vld [vmem:[%s4861_s0 + $0x170] sm:$0xff]  ;;  %v87_v52 = vld [vmem:[%s4861_s0 + $0x178] sm:$0xff]  ;;  %v88_v53 = vld [vmem:[%s4861_s0 + $0x180] sm:$0xff] }
  0x50   :  { %v89_v54 = vld [vmem:[%s4861_s0 + $0x188] sm:$0xff]  ;;  %v90_v58 = vld [vmem:[%s4861_s0 + $0x190] sm:$0xff]  ;;  %v92_v60 = vld [vmem:[%s4861_s0 + $0x1a0] sm:$0xff] }
  0x51   :  { %3214 = vmatmul.mubr.msk.bf16.gmra.mrb[4].mxu0 %vm633_vm4, %v107_v55  ;;  %v127_v55 = vpack.c.bf16 %v87_v52, %v86_v51  ;;  %v128_v56 = vpack.c.bf16 %v89_v54, %v88_v53  ;;  %v93_v61 = vld [vmem:[%s4861_s0 + $0x1a8] sm:$0xff]  ;;  %v98_v6 = vld [vmem:[%s4861_s0 + $0x1d0] sm:$0xff]  ;;  %v4486_v40 = vld [vmem:[%s4865_s4] ss:$0 sm:$0xff] }
  0x52   :  { %3217 = vmatprep.mubr.msk.bf16.mxu0 %vm633_vm4, %v108_v57  ;;  %3284 = vmatpush3.bf16.msra.mxu1 %v3590_v59  ;;  %v3592_v57 = vld [vmem:[%s4866_s5 + $0x38] sm:$0xff]   ;;  %v130_v63 = vpack.c.bf16 %v93_v61, %v92_v60  ;;  %v97_v3 = vld [vmem:[%s4861_s0 + $0x1c8] sm:$0xff]  ;;  %v102_v12 = vld [vmem:[%s4861_s0 + $0x1f0] sm:$0xff] }
  0x53   :  { %3285 = vmatprep.subr.bf16.mxu1 %v3591_v1  ;;  %v91_v59 = vld [vmem:[%s4861_s0 + $0x198] sm:$0xff]  ;;  %v101_v9 = vld [vmem:[%s4861_s0 + $0x1e8] sm:$0xff] }
  0x54   :  { %v129_v62 = vpack.c.bf16 %v91_v59, %v90_v58 }
  0x56   :  { %3286 = vmatpush3.bf16.msra.mxu1 %v3591_v1  ;;  %v95_v1 = vld [vmem:[%s4861_s0 + $0x1b8] sm:$0xff] }
  0x57   :  { %3287 = vmatprep.subr.bf16.mxu1 %v3592_v57 }
  0x59   :  { %3218 = vmatmul.mubr.msk.bf16.gmra.mrb[8].mxu0 %vm633_vm4, %v109_v0  ;;  %v94_v0 = vld [vmem:[%s4861_s0 + $0x1b0] sm:$0xff] }
  0x5a   :  { %3221 = vmatprep.mubr.msk.bf16.mxu0 %vm633_vm4, %v110_v2  ;;  %3288 = vmatpush3.bf16.msra.mxu1 %v3592_v57  ;;  %v96_v2 = vld [vmem:[%s4861_s0 + $0x1c0] sm:$0xff]  ;;  %v131_v4 = vpack.c.bf16 %v95_v1, %v94_v0 }
  0x5b   :  { %v132_v5 = vpack.c.bf16 %v97_v3, %v96_v2 }
  0x61   :  { %3222 = vmatmul.mubr.msk.bf16.gmra.mrb[12].mxu0 %vm633_vm4, %v111_v7  ;;  %v99_v7 = vld [vmem:[%s4861_s0 + $0x1d8] sm:$0xff] }
  0x62   :  { %3225 = vmatprep.mubr.msk.bf16.mxu0 %vm633_vm4, %v112_v8  ;;  %v100_v8 = vld [vmem:[%s4861_s0 + $0x1e0] sm:$0xff]  ;;  %v133_v10 = vpack.c.bf16 %v99_v7, %v98_v6 }
  0x63   :  { %v134_v11 = vpack.c.bf16 %v101_v9, %v100_v8 }
  0x69   :  { %3226 = vmatmul.mubr.msk.bf16.gmra.mrb[16].mxu0 %vm633_vm4, %v113_v13  ;;  %v103_v13 = vld [vmem:[%s4861_s0 + $0x1f8] sm:$0xff] }
  0x6a   :  { %3229 = vmatprep.mubr.msk.bf16.mxu0 %vm633_vm4, %v114_v14  ;;  %v135_v14 = vpack.c.bf16 %v103_v13, %v102_v12 }
  0x71   :  { %3230 = vmatmul.mubr.msk.bf16.gmra.mrb[20].mxu0 %vm633_vm4, %v115_v19 }
  0x72   :  { %3233 = vmatprep.mubr.msk.bf16.mxu0 %vm633_vm4, %v116_v20 }
  0x79   :  { %3234 = vmatmul.mubr.msk.bf16.gmra.mrb[24].mxu0 %vm633_vm4, %v117_v25 }
  0x7a   :  { %3237 = vmatprep.mubr.msk.bf16.mxu0 %vm633_vm4, %v118_v26 }
  0x81   :  { %3238 = vmatmul.mubr.msk.bf16.gmra.mrb[28].mxu0 %vm633_vm4, %v119_v31  ;;  %v3593_v31 = vld [vmem:[%s4868_s7] sm:$0xff]  }
  0x82   :  { %3241 = vmatprep.mubr.msk.bf16.mxu0 %vm633_vm4, %v120_v32  ;;  %3353 = vmatprep.subr.bf16.mxu1 %v3593_v31 }
  0x89   :  { %3242 = vmatmul.mubr.msk.bf16.gmra.mrb[32].mxu0 %vm633_vm4, %v121_v37 }
  0x8a   :  { %3245 = vmatprep.mubr.msk.bf16.mxu0 %vm633_vm4, %v122_v38 }
  0x91   :  { %3246 = vmatmul.mubr.msk.bf16.gmra.mrb[36].mxu0 %vm633_vm4, %v123_v43 }
  0x92   :  { %3249 = vmatprep.mubr.msk.bf16.mxu0 %vm633_vm4, %v124_v44 }
  0x99   :  { %3250 = vmatmul.mubr.msk.bf16.gmra.mrb[40].mxu0 %vm633_vm4, %v125_v49 }
  0x9a   :  { %3253 = vmatprep.mubr.msk.bf16.mxu0 %vm633_vm4, %v126_v50 }
  0xa1   :  { %3254 = vmatmul.mubr.msk.bf16.gmra.mrb[44].mxu0 %vm633_vm4, %v127_v55 }
  0xa2   :  { %3257 = vmatprep.mubr.msk.bf16.mxu0 %vm633_vm4, %v128_v56 }
  0xa9   :  { %3258 = vmatmul.mubr.msk.bf16.gmra.mrb[48].mxu0 %vm633_vm4, %v129_v62  ;;  %v3594_v62 = vld [vmem:[%s4868_s7 + $0x8] sm:$0xff]  }
  0xaa   :  { %3261 = vmatprep.mubr.msk.bf16.mxu0 %vm633_vm4, %v130_v63 }
  0xb1   :  { %3262 = vmatmul.mubr.msk.bf16.gmra.mrb[52].mxu0 %vm633_vm4, %v131_v4 }
  0xb2   :  { %3265 = vmatprep.mubr.msk.bf16.mxu0 %vm633_vm4, %v132_v5 }
  0xb9   :  { %3266 = vmatmul.mubr.msk.bf16.gmra.mrb[56].mxu0 %vm633_vm4, %v133_v10  ;;  %v3595_v10 = vld [vmem:[%s4868_s7 + $0x10] sm:$0xff]  }
  0xba   :  { %3269 = vmatprep.mubr.msk.bf16.mxu0 %vm633_vm4, %v134_v11 }
  0xc1   :  { %3270 = vmatmul.mubr.msk.bf16.gmra.mrb[60].mxu0 %vm633_vm4, %v135_v14 }
  0xdf   :  { %v4432_v15 = vpop.f32.mrb[0].mxu1 }
  0xe0   :  { %v4434_v16 = vpop.f32.mrb[1].mxu1 }
  0xe1   :  { %v4436_v17 = vpop.f32.mrb[2].mxu1 }
  0xe2   :  { %v4438_v18 = vpop.f32.mrb[3].mxu1 }
  0xe7   :  { %v4440_v19 = vpop.f32.mrb[4].mxu1 }
  0xe8   :  { %v4442_v20 = vpop.f32.mrb[5].mxu1 }
  0xe9   :  { %v4444_v21 = vpop.f32.mrb[6].mxu1 }
  0xea   :  { %v4446_v22 = vpop.f32.mrb[7].mxu1 }
  0xef   :  { %v4448_v23 = vpop.f32.mrb[8].mxu1 }
  0xf0   :  { %v4450_v24 = vpop.f32.mrb[9].mxu1 }
  0xf1   :  { %v4452_v25 = vpop.f32.mrb[10].mxu1 }
  0xf2   :  { %v4454_v26 = vpop.f32.mrb[11].mxu1 }
  0xf7   :  { %v4456_v27 = vpop.f32.mrb[12].mxu1 }
  0xf8   :  { %v4458_v28 = vpop.f32.mrb[13].mxu1 }
  0xf9   :  { %v4460_v29 = vpop.f32.mrb[14].mxu1 }
  0xfa   :  { %v4462_v30 = vpop.f32.mrb[15].mxu1 }
  0xff   :  { %v4467_v32 = vpop.f32.mrb[16].mxu1 }
 0x100   :  { %v4469_v33 = vpop.f32.mrb[17].mxu1 }
 0x101   :  { %v4471_v34 = vpop.f32.mrb[18].mxu1 }
 0x102   :  { %v4473_v35 = vpop.f32.mrb[19].mxu1 }
 0x110   :  { %v4475_v36 = vpop.f32.mrb[20].mxu1 }
 0x111   :  { %v4477_v37 = vpop.f32.mrb[21].mxu1 }
 0x112   :  { %v4479_v38 = vpop.f32.mrb[22].mxu1 }
 0x113   :  { %v4481_v39 = vpop.f32.mrb[23].mxu1 }
 0x118   :  { %v4490_v46 = vpop.f32.mrb[24].mxu1 }
 0x119   :  { %v4493_v49 = vpop.f32.mrb[25].mxu1 }
 0x11a   :  { %v4496_v51 = vpop.f32.mrb[26].mxu1 }
 0x11b   :  { %v4498_v54 = vpop.f32.mrb[27].mxu1 }
 0x11c   :  { %v3211_v41 = vpop.f32.mrb[0].mxu0 }
 0x11d   :  { %v1032_v42 = vadd.f32 %v3211_v41, %v4486_v40  ;;  %v768_v43 = vpop.f32.mrb[1].mxu0 }
 0x11e   :  { %v1030_v44 = vadd.f32 %v4486_v40, %v768_v43  ;;  %v3212_v45 = vpop.f32.mrb[2].mxu0  ;;  %v3596_v43 = vld [vmem:[%s4868_s7 + $0x18] sm:$0xff]  }
 0x11f   :  { %v1033_v47 = vadd.f32 %v3212_v45, %v4486_v40  ;;  %v771_v48 = vpop.f32.mrb[3].mxu0  ;;  %v1096_v52 = vmax.f32 %v1032_v42, 0.0 }
 0x120   :  { %v1031_v50 = vadd.f32 %v4486_v40, %v771_v48  ;;  %v1094_v55 = vmax.f32 %v1030_v44, 0.0  ;;  %v4505_v1 = vpop.f32.mrb[28].mxu1 }
 0x121   :  { %v1097_v53 = vmax.f32 %v1033_v47, 0.0  ;;  %v4508_v4 = vpop.f32.mrb[29].mxu1 }
 0x122   :  { %v1095_v56 = vmax.f32 %v1031_v50, 0.0  ;;  %v4511_v6 = vpop.f32.mrb[30].mxu1 }
 0x123   :  { %v1159_v57 = vpack.c.bf16 %v1097_v53, %v1096_v52  ;;  %v4513_v9 = vpop.f32.mrb[31].mxu1 }
 0x124   :  { %v1158_v58 = vpack.c.bf16 %v1095_v56, %v1094_v55  ;;  %v3215_v59 = vpop.f32.mrb[4].mxu0  ;;  %v3597_v55 = vld [vmem:[%s4868_s7 + $0x20] sm:$0xff]  }
 0x125   :  { %v1036_v60 = vadd.f32 %v3215_v59, %v4486_v40  ;;  %v784_v61 = vpop.f32.mrb[5].mxu0 }
 0x126   :  { %v1034_v63 = vadd.f32 %v4486_v40, %v784_v61  ;;  %v3216_v0 = vpop.f32.mrb[6].mxu0  ;;  %3289 = vmatprep.mubr.bf16.mxu1 %v1158_v58 }
 0x127   :  { %v1037_v2 = vadd.f32 %v3216_v0, %v4486_v40  ;;  %v787_v3 = vpop.f32.mrb[7].mxu0  ;;  %3290 = vmatmul.mubr.bf16.vlgmr.msra.gmra.mrb[32].mxu1 %v1159_v57  ;;  %v1100_v7 = vmax.f32 %v1036_v60, 0.0 }
 0x128   :  { %v1035_v5 = vadd.f32 %v4486_v40, %v787_v3  ;;  %3354 = vmatpush3.bf16.msra.mxu1 %v3593_v31  ;;  %v1098_v11 = vmax.f32 %v1034_v63, 0.0  ;;  %v3598_v63 = vld [vmem:[%s4868_s7 + $0x28] sm:$0xff]  }
 0x129   :  { %v1101_v8 = vmax.f32 %v1037_v2, 0.0  ;;  %3355 = vmatprep.subr.bf16.mxu1 %v3594_v62 }
 0x12a   :  { %v1099_v12 = vmax.f32 %v1035_v5, 0.0 }
 0x12b   :  { %v1161_v13 = vpack.c.bf16 %v1101_v8, %v1100_v7 }
 0x12c   :  { %v1160_v14 = vpack.c.bf16 %v1099_v12, %v1098_v11  ;;  %v3219_v41 = vpop.f32.mrb[8].mxu0  ;;  %3356 = vmatpush3.bf16.msra.mxu1 %v3594_v62  ;;  %v3599_v11 = vld [vmem:[%s4868_s7 + $0x30] sm:$0xff]  }
 0x12d   :  { %v1040_v42 = vadd.f32 %v3219_v41, %v4486_v40  ;;  %v800_v31 = vpop.f32.mrb[9].mxu0  ;;  %3357 = vmatprep.subr.bf16.mxu1 %v3595_v10 }
 0x12e   :  { %v1038_v44 = vadd.f32 %v4486_v40, %v800_v31  ;;  %v3220_v45 = vpop.f32.mrb[10].mxu0  ;;  %3293 = vmatprep.mubr.bf16.mxu1 %v1160_v14 }
 0x12f   :  { %v1041_v47 = vadd.f32 %v3220_v45, %v4486_v40  ;;  %v803_v48 = vpop.f32.mrb[11].mxu0  ;;  %3294 = vmatmul.mubr.bf16.gmra.mrb[36].mxu1 %v1161_v13  ;;  %v1104_v52 = vmax.f32 %v1040_v42, 0.0 }
 0x130   :  { %v1039_v50 = vadd.f32 %v4486_v40, %v803_v48  ;;  %3358 = vmatpush3.bf16.msra.mxu1 %v3595_v10  ;;  %v1102_v56 = vmax.f32 %v1038_v44, 0.0  ;;  %v3600_v44 = vld [vmem:[%s4868_s7 + $0x38] sm:$0xff]  }
 0x131   :  { %v1105_v53 = vmax.f32 %v1041_v47, 0.0  ;;  %3359 = vmatprep.subr.bf16.mxu1 %v3596_v43 }
 0x132   :  { %v1103_v57 = vmax.f32 %v1039_v50, 0.0 }
 0x133   :  { %v1163_v58 = vpack.c.bf16 %v1105_v53, %v1104_v52 }
 0x134   :  { %v1162_v59 = vpack.c.bf16 %v1103_v57, %v1102_v56  ;;  %v3223_v60 = vpop.f32.mrb[12].mxu0  ;;  %3360 = vmatpush3.bf16.msra.mxu1 %v3596_v43 }
 0x135   :  { %v1044_v61 = vadd.f32 %v3223_v60, %v4486_v40  ;;  %v816_v62 = vpop.f32.mrb[13].mxu0  ;;  %3361 = vmatprep.subr.bf16.mxu1 %v3597_v55 }
 0x136   :  { %v1042_v0 = vadd.f32 %v4486_v40, %v816_v62  ;;  %v3224_v2 = vpop.f32.mrb[14].mxu0  ;;  %3297 = vmatprep.mubr.bf16.mxu1 %v1162_v59 }
 0x137   :  { %v1045_v3 = vadd.f32 %v3224_v2, %v4486_v40  ;;  %v819_v5 = vpop.f32.mrb[15].mxu0  ;;  %3298 = vmatmul.mubr.bf16.gmra.mrb[40].mxu1 %v1163_v58  ;;  %v1108_v8 = vmax.f32 %v1044_v61, 0.0 }
 0x138   :  { %v1043_v7 = vadd.f32 %v4486_v40, %v819_v5  ;;  %3362 = vmatpush3.bf16.msra.mxu1 %v3597_v55  ;;  %v1106_v12 = vmax.f32 %v1042_v0, 0.0 }
 0x139   :  { %v1109_v10 = vmax.f32 %v1045_v3, 0.0  ;;  %3363 = vmatprep.subr.bf16.mxu1 %v3598_v63 }
 0x13a   :  { %v1107_v13 = vmax.f32 %v1043_v7, 0.0 }
 0x13b   :  { %v1165_v14 = vpack.c.bf16 %v1109_v10, %v1108_v8 }
 0x13c   :  { %v1164_v41 = vpack.c.bf16 %v1107_v13, %v1106_v12  ;;  %v3227_v42 = vpop.f32.mrb[16].mxu0  ;;  %3364 = vmatpush3.bf16.msra.mxu1 %v3598_v63 }
 0x13d   :  { %v1048_v31 = vadd.f32 %v3227_v42, %v4486_v40  ;;  %v832_v43 = vpop.f32.mrb[17].mxu0  ;;  %3365 = vmatprep.subr.bf16.mxu1 %v3599_v11 }
 0x13e   :  { %v1046_v45 = vadd.f32 %v4486_v40, %v832_v43  ;;  %v3228_v47 = vpop.f32.mrb[18].mxu0  ;;  %3301 = vmatprep.mubr.bf16.mxu1 %v1164_v41 }
 0x13f   :  { %v1049_v48 = vadd.f32 %v3228_v47, %v4486_v40  ;;  %v835_v50 = vpop.f32.mrb[19].mxu0  ;;  %3302 = vmatmul.mubr.bf16.gmra.mrb[44].mxu1 %v1165_v14  ;;  %v1112_v53 = vmax.f32 %v1048_v31, 0.0 }
 0x140   :  { %v1047_v52 = vadd.f32 %v4486_v40, %v835_v50  ;;  %3366 = vmatpush3.bf16.msra.mxu1 %v3599_v11  ;;  %v1110_v56 = vmax.f32 %v1046_v45, 0.0 }
 0x141   :  { %v1113_v55 = vmax.f32 %v1049_v48, 0.0  ;;  %3367 = vmatprep.subr.bf16.mxu1 %v3600_v44 }
 0x142   :  { %v1111_v57 = vmax.f32 %v1047_v52, 0.0 }
 0x143   :  { %v1167_v58 = vpack.c.bf16 %v1113_v55, %v1112_v53 }
 0x144   :  { %v1166_v59 = vpack.c.bf16 %v1111_v57, %v1110_v56  ;;  %v3231_v60 = vpop.f32.mrb[20].mxu0  ;;  %3368 = vmatpush3.bf16.msra.mxu1 %v3600_v44 }
 0x145   :  { %v1052_v61 = vadd.f32 %v3231_v60, %v4486_v40  ;;  %v848_v62 = vpop.f32.mrb[21].mxu0 }
 0x146   :  { %v1050_v63 = vadd.f32 %v4486_v40, %v848_v62  ;;  %v3232_v0 = vpop.f32.mrb[22].mxu0  ;;  %3305 = vmatprep.mubr.bf16.mxu1 %v1166_v59 }
 0x147   :  { %v1053_v2 = vadd.f32 %v3232_v0, %v4486_v40  ;;  %v851_v3 = vpop.f32.mrb[23].mxu0  ;;  %3306 = vmatmul.mubr.bf16.gmra.mrb[48].mxu1 %v1167_v58  ;;  %v1116_v7 = vmax.f32 %v1052_v61, 0.0 }
 0x148   :  { %v1051_v5 = vadd.f32 %v4486_v40, %v851_v3  ;;  %v1114_v10 = vmax.f32 %v1050_v63, 0.0 }
 0x149   :  { %v1117_v8 = vmax.f32 %v1053_v2, 0.0 }
 0x14a   :  { %v1115_v11 = vmax.f32 %v1051_v5, 0.0 }
 0x14b   :  { %v1169_v12 = vpack.c.bf16 %v1117_v8, %v1116_v7 }
 0x14c   :  { %v1168_v13 = vpack.c.bf16 %v1115_v11, %v1114_v10  ;;  %v3235_v14 = vpop.f32.mrb[24].mxu0 }
 0x14d   :  { %v1056_v41 = vadd.f32 %v3235_v14, %v4486_v40  ;;  %v864_v42 = vpop.f32.mrb[25].mxu0 }
 0x14e   :  { %v1054_v31 = vadd.f32 %v4486_v40, %v864_v42  ;;  %v3236_v43 = vpop.f32.mrb[26].mxu0  ;;  %3309 = vmatprep.mubr.bf16.mxu1 %v1168_v13 }
 0x14f   :  { %v1057_v44 = vadd.f32 %v3236_v43, %v4486_v40  ;;  %v867_v45 = vpop.f32.mrb[27].mxu0  ;;  %3310 = vmatmul.mubr.bf16.gmra.mrb[52].mxu1 %v1169_v12  ;;  %v1120_v48 = vmax.f32 %v1056_v41, 0.0 }
 0x150   :  { %v1055_v47 = vadd.f32 %v4486_v40, %v867_v45  ;;  %v1118_v52 = vmax.f32 %v1054_v31, 0.0 }
 0x151   :  { %v1121_v50 = vmax.f32 %v1057_v44, 0.0 }
 0x152   :  { %v1119_v53 = vmax.f32 %v1055_v47, 0.0 }
 0x153   :  { %v1171_v55 = vpack.c.bf16 %v1121_v50, %v1120_v48 }
 0x154   :  { %v1170_v56 = vpack.c.bf16 %v1119_v53, %v1118_v52  ;;  %v3239_v57 = vpop.f32.mrb[28].mxu0 }
 0x155   :  { %v1060_v58 = vadd.f32 %v3239_v57, %v4486_v40  ;;  %v880_v59 = vpop.f32.mrb[29].mxu0 }
 0x156   :  { %v1058_v60 = vadd.f32 %v4486_v40, %v880_v59  ;;  %v3240_v61 = vpop.f32.mrb[30].mxu0  ;;  %3313 = vmatprep.mubr.bf16.mxu1 %v1170_v56 }
 0x157   :  { %v1061_v62 = vadd.f32 %v3240_v61, %v4486_v40  ;;  %v883_v63 = vpop.f32.mrb[31].mxu0  ;;  %3314 = vmatmul.mubr.bf16.gmra.mrb[56].mxu1 %v1171_v55  ;;  %v1124_v2 = vmax.f32 %v1060_v58, 0.0 }
 0x158   :  { %v1059_v0 = vadd.f32 %v4486_v40, %v883_v63  ;;  %v1122_v5 = vmax.f32 %v1058_v60, 0.0 }
 0x159   :  { %v1125_v3 = vmax.f32 %v1061_v62, 0.0 }
 0x15a   :  { %v1123_v7 = vmax.f32 %v1059_v0, 0.0 }
 0x15b   :  { %v1173_v8 = vpack.c.bf16 %v1125_v3, %v1124_v2 }
 0x15c   :  { %v1172_v10 = vpack.c.bf16 %v1123_v7, %v1122_v5  ;;  %v3243_v11 = vpop.f32.mrb[32].mxu0 }
 0x15d   :  { %v905_v12 = vadd.f32 %v3243_v11, %v4432_v15  ;;  %v896_v13 = vpop.f32.mrb[33].mxu0 }
 0x15e   :  { %v897_v14 = vadd.f32 %v896_v13, %v4434_v16  ;;  %v3244_v41 = vpop.f32.mrb[34].mxu0  ;;  %3317 = vmatprep.mubr.bf16.mxu1 %v1172_v10 }
 0x15f   :  { %v1064_v42 = vadd.f32 %v4486_v40, %v905_v12  ;;  %v908_v31 = vadd.f32 %v3244_v41, %v4436_v17  ;;  %v899_v43 = vpop.f32.mrb[35].mxu0  ;;  %3318 = vmatmul.mubr.bf16.gmra.mrb[60].mxu1 %v1173_v8 }
 0x160   :  { %v1062_v44 = vadd.f32 %v4486_v40, %v897_v14  ;;  %v900_v45 = vadd.f32 %v899_v43, %v4438_v18 }
 0x161   :  { %v1065_v47 = vadd.f32 %v4486_v40, %v908_v31  ;;  %v1128_v15 = vmax.f32 %v1064_v42, 0.0 }
 0x162   :  { %v1063_v48 = vadd.f32 %v4486_v40, %v900_v45  ;;  %v1126_v52 = vmax.f32 %v1062_v44, 0.0 }
 0x163   :  { %v1129_v50 = vmax.f32 %v1065_v47, 0.0 }
 0x164   :  { %v1127_v16 = vmax.f32 %v1063_v48, 0.0  ;;  %v3247_v53 = vpop.f32.mrb[36].mxu0 }
 0x165   :  { %v921_v55 = vadd.f32 %v3247_v53, %v4440_v19  ;;  %v912_v56 = vpop.f32.mrb[37].mxu0  ;;  %v1175_v57 = vpack.c.bf16 %v1129_v50, %v1128_v15 }
 0x166   :  { %v913_v17 = vadd.f32 %v912_v56, %v4442_v20  ;;  %v3248_v58 = vpop.f32.mrb[38].mxu0  ;;  %v1174_v59 = vpack.c.bf16 %v1127_v16, %v1126_v52 }
 0x167   :  { %v1068_v60 = vadd.f32 %v4486_v40, %v921_v55  ;;  %v924_v18 = vadd.f32 %v3248_v58, %v4444_v21  ;;  %v915_v61 = vpop.f32.mrb[39].mxu0 }
 0x168   :  { %v1066_v62 = vadd.f32 %v4486_v40, %v913_v17  ;;  %v916_v63 = vadd.f32 %v915_v61, %v4446_v22  ;;  %3321 = vmatprep.mubr.bf16.mxu1 %v1174_v59 }
 0x169   :  { %v1069_v0 = vadd.f32 %v4486_v40, %v924_v18  ;;  %3322 = vmatmul.mubr.bf16.gmra.mrb[64].mxu1 %v1175_v57  ;;  %v1132_v2 = vmax.f32 %v1068_v60, 0.0 }
 0x16a   :  { %v1067_v19 = vadd.f32 %v4486_v40, %v916_v63  ;;  %v1130_v20 = vmax.f32 %v1066_v62, 0.0 }
 0x16b   :  { %v1133_v3 = vmax.f32 %v1069_v0, 0.0 }
 0x16c   :  { %v1131_v5 = vmax.f32 %v1067_v19, 0.0  ;;  %v3251_v7 = vpop.f32.mrb[40].mxu0 }
 0x16d   :  { %v937_v8 = vadd.f32 %v3251_v7, %v4448_v23  ;;  %v928_v10 = vpop.f32.mrb[41].mxu0  ;;  %v1177_v21 = vpack.c.bf16 %v1133_v3, %v1132_v2 }
 0x16e   :  { %v929_v11 = vadd.f32 %v928_v10, %v4450_v24  ;;  %v3252_v12 = vpop.f32.mrb[42].mxu0  ;;  %v1176_v13 = vpack.c.bf16 %v1131_v5, %v1130_v20 }
 0x16f   :  { %v1072_v22 = vadd.f32 %v4486_v40, %v937_v8  ;;  %v940_v14 = vadd.f32 %v3252_v12, %v4452_v25  ;;  %v931_v41 = vpop.f32.mrb[43].mxu0 }
 0x170   :  { %v1070_v42 = vadd.f32 %v4486_v40, %v929_v11  ;;  %v932_v31 = vadd.f32 %v931_v41, %v4454_v26  ;;  %3325 = vmatprep.mubr.bf16.mxu1 %v1176_v13 }
 0x171   :  { %v1073_v43 = vadd.f32 %v4486_v40, %v940_v14  ;;  %3326 = vmatmul.mubr.bf16.gmra.mrb[68].mxu1 %v1177_v21  ;;  %v1136_v44 = vmax.f32 %v1072_v22, 0.0 }
 0x172   :  { %v1071_v23 = vadd.f32 %v4486_v40, %v932_v31  ;;  %v1134_v24 = vmax.f32 %v1070_v42, 0.0 }
 0x173   :  { %v1137_v45 = vmax.f32 %v1073_v43, 0.0 }
 0x174   :  { %v1135_v47 = vmax.f32 %v1071_v23, 0.0  ;;  %v3255_v48 = vpop.f32.mrb[44].mxu0 }
 0x175   :  { %v953_v15 = vadd.f32 %v3255_v48, %v4456_v27  ;;  %v944_v50 = vpop.f32.mrb[45].mxu0  ;;  %v1179_v25 = vpack.c.bf16 %v1137_v45, %v1136_v44 }
 0x176   :  { %v945_v52 = vadd.f32 %v944_v50, %v4458_v28  ;;  %v3256_v16 = vpop.f32.mrb[46].mxu0  ;;  %v1178_v53 = vpack.c.bf16 %v1135_v47, %v1134_v24 }
 0x177   :  { %v1076_v26 = vadd.f32 %v4486_v40, %v953_v15  ;;  %v956_v55 = vadd.f32 %v3256_v16, %v4460_v29  ;;  %v947_v56 = vpop.f32.mrb[47].mxu0 }
 0x178   :  { %v1074_v57 = vadd.f32 %v4486_v40, %v945_v52  ;;  %v948_v17 = vadd.f32 %v947_v56, %v4462_v30  ;;  %3329 = vmatprep.mubr.bf16.mxu1 %v1178_v53 }
 0x179   :  { %v1077_v58 = vadd.f32 %v4486_v40, %v956_v55  ;;  %3330 = vmatmul.mubr.bf16.gmra.mrb[72].mxu1 %v1179_v25  ;;  %v1140_v59 = vmax.f32 %v1076_v26, 0.0 }
 0x17a   :  { %v1075_v27 = vadd.f32 %v4486_v40, %v948_v17  ;;  %v1138_v28 = vmax.f32 %v1074_v57, 0.0 }
 0x17b   :  { %v1141_v60 = vmax.f32 %v1077_v58, 0.0 }
 0x17c   :  { %v1139_v18 = vmax.f32 %v1075_v27, 0.0  ;;  %v3259_v61 = vpop.f32.mrb[48].mxu0 }
 0x17d   :  { %v969_v62 = vadd.f32 %v3259_v61, %v4467_v32  ;;  %v960_v63 = vpop.f32.mrb[49].mxu0  ;;  %v1181_v29 = vpack.c.bf16 %v1141_v60, %v1140_v59 }
 0x17e   :  { %v961_v0 = vadd.f32 %v960_v63, %v4469_v33  ;;  %v3260_v19 = vpop.f32.mrb[50].mxu0  ;;  %v1180_v2 = vpack.c.bf16 %v1139_v18, %v1138_v28 }
 0x17f   :  { %v1080_v30 = vadd.f32 %v4486_v40, %v969_v62  ;;  %v972_v3 = vadd.f32 %v3260_v19, %v4471_v34  ;;  %v963_v20 = vpop.f32.mrb[51].mxu0 }
 0x180   :  { %v1078_v5 = vadd.f32 %v4486_v40, %v961_v0  ;;  %v964_v7 = vadd.f32 %v963_v20, %v4473_v35  ;;  %3333 = vmatprep.mubr.bf16.mxu1 %v1180_v2 }
 0x181   :  { %v1081_v8 = vadd.f32 %v4486_v40, %v972_v3  ;;  %3334 = vmatmul.mubr.bf16.gmra.mrb[76].mxu1 %v1181_v29  ;;  %v1144_v10 = vmax.f32 %v1080_v30, 0.0 }
 0x182   :  { %v1079_v32 = vadd.f32 %v4486_v40, %v964_v7  ;;  %v1142_v33 = vmax.f32 %v1078_v5, 0.0 }
 0x183   :  { %v1145_v21 = vmax.f32 %v1081_v8, 0.0 }
 0x184   :  { %v1143_v11 = vmax.f32 %v1079_v32, 0.0  ;;  %v3263_v12 = vpop.f32.mrb[52].mxu0 }
 0x185   :  { %v985_v13 = vadd.f32 %v3263_v12, %v4475_v36  ;;  %v976_v22 = vpop.f32.mrb[53].mxu0  ;;  %v1183_v34 = vpack.c.bf16 %v1145_v21, %v1144_v10 }
 0x186   :  { %v977_v14 = vadd.f32 %v976_v22, %v4477_v37  ;;  %v3264_v41 = vpop.f32.mrb[54].mxu0  ;;  %v1182_v42 = vpack.c.bf16 %v1143_v11, %v1142_v33 }
 0x187   :  { %v1084_v35 = vadd.f32 %v4486_v40, %v985_v13  ;;  %v988_v31 = vadd.f32 %v3264_v41, %v4479_v38  ;;  %v979_v43 = vpop.f32.mrb[55].mxu0  ;;  %v3603_v41 = vld [vmem:[%s4870_s9 + $0x10] sm:$0xff]  }
 0x188   :  { %v1082_v23 = vadd.f32 %v4486_v40, %v977_v14  ;;  %v980_v44 = vadd.f32 %v979_v43, %v4481_v39  ;;  %3337 = vmatprep.mubr.bf16.mxu1 %v1182_v42  ;;  %v3604_v42 = vld [vmem:[%s4870_s9 + $0x18] sm:$0xff]  }
 0x189   :  { %v1085_v45 = vadd.f32 %v4486_v40, %v988_v31  ;;  %3338 = vmatmul.mubr.bf16.gmra.mrb[80].mxu1 %v1183_v34  ;;  %v1148_v24 = vmax.f32 %v1084_v35, 0.0 }
 0x18a   :  { %v1083_v36 = vadd.f32 %v4486_v40, %v980_v44  ;;  %v1146_v37 = vmax.f32 %v1082_v23, 0.0 }
 0x18b   :  { %v1149_v47 = vmax.f32 %v1085_v45, 0.0 }
 0x18c   :  { %v1147_v48 = vmax.f32 %v1083_v36, 0.0  ;;  %v3267_v15 = vpop.f32.mrb[56].mxu0 }
 0x18d   :  { %v1001_v50 = vadd.f32 %v3267_v15, %v4490_v46  ;;  %v992_v25 = vpop.f32.mrb[57].mxu0  ;;  %v1185_v38 = vpack.c.bf16 %v1149_v47, %v1148_v24  ;;  %v3605_v24 = vld [vmem:[%s4870_s9 + $0x20] sm:$0xff]  }
 0x18e   :  { %v993_v52 = vadd.f32 %v992_v25, %v4493_v49  ;;  %v3268_v16 = vpop.f32.mrb[58].mxu0  ;;  %v1184_v53 = vpack.c.bf16 %v1147_v48, %v1146_v37 }
 0x18f   :  { %v1088_v39 = vadd.f32 %v4486_v40, %v1001_v50  ;;  %v1004_v26 = vadd.f32 %v3268_v16, %v4496_v51  ;;  %v995_v55 = vpop.f32.mrb[59].mxu0 }
 0x190   :  { %v1086_v56 = vadd.f32 %v4486_v40, %v993_v52  ;;  %v996_v57 = vadd.f32 %v995_v55, %v4498_v54  ;;  %3341 = vmatprep.mubr.bf16.mxu1 %v1184_v53  ;;  %v3606_v52 = vld [vmem:[%s4870_s9 + $0x28] sm:$0xff]  }
 0x191   :  { %v1089_v17 = vadd.f32 %v4486_v40, %v1004_v26  ;;  %3342 = vmatmul.mubr.bf16.gmra.mrb[84].mxu1 %v1185_v38  ;;  %v1152_v58 = vmax.f32 %v1088_v39, 0.0 }
 0x192   :  { %v1087_v46 = vadd.f32 %v4486_v40, %v996_v57  ;;  %v1150_v49 = vmax.f32 %v1086_v56, 0.0 }
 0x193   :  { %v1153_v27 = vmax.f32 %v1089_v17, 0.0  ;;  %v3607_v17 = vld [vmem:[%s4870_s9 + $0x30] sm:$0xff]  }
 0x194   :  { %v1151_v59 = vmax.f32 %v1087_v46, 0.0  ;;  %v3271_v60 = vpop.f32.mrb[60].mxu0 }
 0x195   :  { %v1017_v28 = vadd.f32 %v3271_v60, %v4505_v1  ;;  %v1008_v18 = vpop.f32.mrb[61].mxu0  ;;  %v1187_v51 = vpack.c.bf16 %v1153_v27, %v1152_v58 }
 0x196   :  { %v1009_v61 = vadd.f32 %v1008_v18, %v4508_v4  ;;  %v3272_v62 = vpop.f32.mrb[62].mxu0  ;;  %v1186_v63 = vpack.c.bf16 %v1151_v59, %v1150_v49  ;;  %v3608_v18 = vld [vmem:[%s4870_s9 + $0x38] sm:$0xff]  }
 0x197   :  { %v1092_v54 = vadd.f32 %v4486_v40, %v1017_v28  ;;  %v1020_v29 = vadd.f32 %v3272_v62, %v4511_v6  ;;  %v1011_v0 = vpop.f32.mrb[63].mxu0  ;;  %v3601_v6 = vld [vmem:[%s4870_s9] sm:$0xff]  }
 0x198   :  { %v1090_v19 = vadd.f32 %v4486_v40, %v1009_v61  ;;  %v1012_v2 = vadd.f32 %v1011_v0, %v4513_v9  ;;  %3345 = vmatprep.mubr.bf16.mxu1 %v1186_v63  ;;  %3433 = vmatprep.subr.bf16.mxu0 %v3601_v6  ;;  %v4627_v9 = vld [vmem:[%s4867_s6] ss:$0 sm:$0xff] }
 0x199   :  { %v1093_v30 = vadd.f32 %v4486_v40, %v1020_v29  ;;  %3346 = vmatmul.mubr.bf16.gmra.mrb[88].mxu1 %v1187_v51  ;;  %v1156_v3 = vmax.f32 %v1092_v54, 0.0  ;;  %3434 = vmatpush3.bf16.msra.mxu0 %v3601_v6 }
 0x19a   :  { %v1091_v1 = vadd.f32 %v4486_v40, %v1012_v2  ;;  %v1154_v4 = vmax.f32 %v1090_v19, 0.0  ;;  %v3602_v40 = vld [vmem:[%s4870_s9 + $0x8] sm:$0xff]  }
 0x19b   :  { %v1157_v20 = vmax.f32 %v1093_v30, 0.0  ;;  %3435 = vmatprep.subr.bf16.mxu0 %v3602_v40 }
 0x19c   :  { %v1155_v5 = vmax.f32 %v1091_v1, 0.0 }
 0x19d   :  { %v1189_v7 = vpack.c.bf16 %v1157_v20, %v1156_v3  ;;  %3436 = vmatpush3.bf16.msra.mxu0 %v3602_v40 }
 0x19e   :  { %v1188_v8 = vpack.c.bf16 %v1155_v5, %v1154_v4  ;;  %3437 = vmatprep.subr.bf16.mxu0 %v3603_v41 }
 0x1a0   :  { %3349 = vmatprep.mubr.bf16.mxu1 %v1188_v8 }
 0x1a1   :  { %3350 = vmatmul.mubr.bf16.gmra.mrb[92].mxu1 %v1189_v7  ;;  %3438 = vmatpush3.bf16.msra.mxu0 %v3603_v41 }
 0x1a2   :  { %3439 = vmatprep.subr.bf16.mxu0 %v3604_v42 }
 0x1a5   :  { %3440 = vmatpush3.bf16.msra.mxu0 %v3604_v42 }
 0x1a6   :  { %3441 = vmatprep.subr.bf16.mxu0 %v3605_v24 }
 0x1a9   :  { %3442 = vmatpush3.bf16.msra.mxu0 %v3605_v24 }
 0x1aa   :  { %3443 = vmatprep.subr.bf16.mxu0 %v3606_v52 }
 0x1ad   :  { %3444 = vmatpush3.bf16.msra.mxu0 %v3606_v52 }
 0x1ae   :  { %3445 = vmatprep.subr.bf16.mxu0 %v3607_v17 }
 0x1b1   :  { %3446 = vmatpush3.bf16.msra.mxu0 %v3607_v17 }
 0x1b2   :  { %3447 = vmatprep.subr.bf16.mxu0 %v3608_v18 }
 0x1b5   :  { %3448 = vmatpush3.bf16.msra.mxu0 %v3608_v18 }
 0x1fa   :  { %v3291_v32 = vpop.f32.mrb[32].mxu1 }
 0x1fb   :  { %v1304_v10 = vadd.f32 %v3291_v32, %v4627_v9  ;;  %v1295_v21 = vpop.f32.mrb[33].mxu1 }
 0x1fc   :  { %v1296_v33 = vadd.f32 %v4627_v9, %v1295_v21  ;;  %v3292_v11 = vpop.f32.mrb[34].mxu1 }
 0x1fd   :  { %v1307_v12 = vadd.f32 %v3292_v11, %v4627_v9  ;;  %v1298_v13 = vpop.f32.mrb[35].mxu1  ;;  %v1552_v34 = vmax.f32 %v1304_v10, 0.0 }
 0x1fe   :  { %v1299_v22 = vadd.f32 %v4627_v9, %v1298_v13  ;;  %v1550_v35 = vmax.f32 %v1296_v33, 0.0 }
 0x1ff   :  { %v1553_v14 = vmax.f32 %v1307_v12, 0.0 }
 0x200   :  { %v1551_v31 = vmax.f32 %v1299_v22, 0.0 }
 0x201   :  { %v1615_v43 = vpack.c.bf16 %v1553_v14, %v1552_v34 }
 0x202   :  { %v1614_v23 = vpack.c.bf16 %v1551_v31, %v1550_v35  ;;  %v3295_v44 = vpop.f32.mrb[36].mxu1 }
 0x203   :  { %v1320_v45 = vadd.f32 %v3295_v44, %v4627_v9  ;;  %v1311_v36 = vpop.f32.mrb[37].mxu1 }
 0x204   :  { %v1312_v47 = vadd.f32 %v4627_v9, %v1311_v36  ;;  %v3296_v37 = vpop.f32.mrb[38].mxu1  ;;  %3369 = vmatprep.mubr.bf16.mxu1 %v1614_v23 }
 0x205   :  { %v1323_v48 = vadd.f32 %v3296_v37, %v4627_v9  ;;  %v1314_v15 = vpop.f32.mrb[39].mxu1  ;;  %3370 = vmatmul.mubr.bf16.vlgmr.msra.gmra.mrb[96].mxu1 %v1615_v43  ;;  %v1556_v25 = vmax.f32 %v1320_v45, 0.0 }
 0x206   :  { %v1315_v50 = vadd.f32 %v4627_v9, %v1314_v15  ;;  %v1554_v16 = vmax.f32 %v1312_v47, 0.0 }
 0x207   :  { %v1557_v38 = vmax.f32 %v1323_v48, 0.0 }
 0x208   :  { %v1555_v53 = vmax.f32 %v1315_v50, 0.0 }
 0x209   :  { %v1617_v39 = vpack.c.bf16 %v1557_v38, %v1556_v25 }
 0x20a   :  { %v1616_v26 = vpack.c.bf16 %v1555_v53, %v1554_v16  ;;  %v3299_v55 = vpop.f32.mrb[40].mxu1 }
 0x20b   :  { %v1336_v56 = vadd.f32 %v3299_v55, %v4627_v9  ;;  %v1327_v57 = vpop.f32.mrb[41].mxu1 }
 0x20c   :  { %v1328_v46 = vadd.f32 %v4627_v9, %v1327_v57  ;;  %v3300_v58 = vpop.f32.mrb[42].mxu1  ;;  %3373 = vmatprep.mubr.bf16.mxu1 %v1616_v26 }
 0x20d   :  { %v1339_v27 = vadd.f32 %v3300_v58, %v4627_v9  ;;  %v1330_v49 = vpop.f32.mrb[43].mxu1  ;;  %3374 = vmatmul.mubr.bf16.gmra.mrb[100].mxu1 %v1617_v39  ;;  %v1560_v60 = vmax.f32 %v1336_v56, 0.0 }
 0x20e   :  { %v1331_v59 = vadd.f32 %v4627_v9, %v1330_v49  ;;  %v1558_v51 = vmax.f32 %v1328_v46, 0.0 }
 0x20f   :  { %v1561_v28 = vmax.f32 %v1339_v27, 0.0 }
 0x210   :  { %v1559_v61 = vmax.f32 %v1331_v59, 0.0 }
 0x211   :  { %v1619_v62 = vpack.c.bf16 %v1561_v28, %v1560_v60 }
 0x212   :  { %v1618_v63 = vpack.c.bf16 %v1559_v61, %v1558_v51  ;;  %v3303_v54 = vpop.f32.mrb[44].mxu1 }
 0x213   :  { %v1352_v29 = vadd.f32 %v3303_v54, %v4627_v9  ;;  %v1343_v0 = vpop.f32.mrb[45].mxu1 }
 0x214   :  { %v1344_v19 = vadd.f32 %v4627_v9, %v1343_v0  ;;  %v3304_v2 = vpop.f32.mrb[46].mxu1  ;;  %3377 = vmatprep.mubr.bf16.mxu1 %v1618_v63 }
 0x215   :  { %v1355_v30 = vadd.f32 %v3304_v2, %v4627_v9  ;;  %v1346_v1 = vpop.f32.mrb[47].mxu1  ;;  %3378 = vmatmul.mubr.bf16.gmra.mrb[104].mxu1 %v1619_v62  ;;  %v1564_v20 = vmax.f32 %v1352_v29, 0.0 }
 0x216   :  { %v1347_v3 = vadd.f32 %v4627_v9, %v1346_v1  ;;  %v1562_v5 = vmax.f32 %v1344_v19, 0.0 }
 0x217   :  { %v1565_v4 = vmax.f32 %v1355_v30, 0.0 }
 0x218   :  { %v1563_v7 = vmax.f32 %v1347_v3, 0.0 }
 0x219   :  { %v1621_v8 = vpack.c.bf16 %v1565_v4, %v1564_v20 }
 0x21a   :  { %v1620_v6 = vpack.c.bf16 %v1563_v7, %v1562_v5  ;;  %v3307_v40 = vpop.f32.mrb[48].mxu1 }
 0x21b   :  { %v1368_v32 = vadd.f32 %v3307_v40, %v4627_v9  ;;  %v1359_v10 = vpop.f32.mrb[49].mxu1 }
 0x21c   :  { %v1360_v21 = vadd.f32 %v4627_v9, %v1359_v10  ;;  %v3308_v33 = vpop.f32.mrb[50].mxu1  ;;  %3381 = vmatprep.mubr.bf16.mxu1 %v1620_v6 }
 0x21d   :  { %v1371_v11 = vadd.f32 %v3308_v33, %v4627_v9  ;;  %v1362_v12 = vpop.f32.mrb[51].mxu1  ;;  %3382 = vmatmul.mubr.bf16.gmra.mrb[108].mxu1 %v1621_v8  ;;  %v1568_v22 = vmax.f32 %v1368_v32, 0.0 }
 0x21e   :  { %v1363_v13 = vadd.f32 %v4627_v9, %v1362_v12  ;;  %v1566_v14 = vmax.f32 %v1360_v21, 0.0 }
 0x21f   :  { %v1569_v34 = vmax.f32 %v1371_v11, 0.0 }
 0x220   :  { %v1567_v41 = vmax.f32 %v1363_v13, 0.0 }
 0x221   :  { %v1623_v42 = vpack.c.bf16 %v1569_v34, %v1568_v22 }
 0x222   :  { %v1622_v35 = vpack.c.bf16 %v1567_v41, %v1566_v14  ;;  %v3311_v31 = vpop.f32.mrb[52].mxu1 }
 0x223   :  { %v1384_v43 = vadd.f32 %v3311_v31, %v4627_v9  ;;  %v1375_v23 = vpop.f32.mrb[53].mxu1 }
 0x224   :  { %v1376_v44 = vadd.f32 %v4627_v9, %v1375_v23  ;;  %v3312_v45 = vpop.f32.mrb[54].mxu1  ;;  %3385 = vmatprep.mubr.bf16.mxu1 %v1622_v35 }
 0x225   :  { %v1387_v36 = vadd.f32 %v3312_v45, %v4627_v9  ;;  %v1378_v24 = vpop.f32.mrb[55].mxu1  ;;  %3386 = vmatmul.mubr.bf16.gmra.mrb[112].mxu1 %v1623_v42  ;;  %v1572_v37 = vmax.f32 %v1384_v43, 0.0 }
 0x226   :  { %v1379_v47 = vadd.f32 %v4627_v9, %v1378_v24  ;;  %v1570_v15 = vmax.f32 %v1376_v44, 0.0 }
 0x227   :  { %v1573_v48 = vmax.f32 %v1387_v36, 0.0 }
 0x228   :  { %v1571_v50 = vmax.f32 %v1379_v47, 0.0 }
 0x229   :  { %v1625_v25 = vpack.c.bf16 %v1573_v48, %v1572_v37 }
 0x22a   :  { %v1624_v38 = vpack.c.bf16 %v1571_v50, %v1570_v15  ;;  %v3315_v52 = vpop.f32.mrb[56].mxu1 }
 0x22b   :  { %v1400_v16 = vadd.f32 %v3315_v52, %v4627_v9  ;;  %v1391_v53 = vpop.f32.mrb[57].mxu1 }
 0x22c   :  { %v1392_v39 = vadd.f32 %v4627_v9, %v1391_v53  ;;  %v3316_v26 = vpop.f32.mrb[58].mxu1  ;;  %3389 = vmatprep.mubr.bf16.mxu1 %v1624_v38 }
 0x22d   :  { %v1403_v55 = vadd.f32 %v3316_v26, %v4627_v9  ;;  %v1394_v56 = vpop.f32.mrb[59].mxu1  ;;  %3390 = vmatmul.mubr.bf16.gmra.mrb[116].mxu1 %v1625_v25  ;;  %v1576_v17 = vmax.f32 %v1400_v16, 0.0 }
 0x22e   :  { %v1395_v57 = vadd.f32 %v4627_v9, %v1394_v56  ;;  %v1574_v58 = vmax.f32 %v1392_v39, 0.0 }
 0x22f   :  { %v1577_v46 = vmax.f32 %v1403_v55, 0.0 }
 0x230   :  { %v1575_v27 = vmax.f32 %v1395_v57, 0.0 }
 0x231   :  { %v1627_v49 = vpack.c.bf16 %v1577_v46, %v1576_v17 }
 0x232   :  { %v1626_v59 = vpack.c.bf16 %v1575_v27, %v1574_v58  ;;  %v3319_v60 = vpop.f32.mrb[60].mxu1 }
 0x233   :  { %v1416_v28 = vadd.f32 %v3319_v60, %v4627_v9  ;;  %v1407_v18 = vpop.f32.mrb[61].mxu1 }
 0x234   :  { %v1408_v51 = vadd.f32 %v4627_v9, %v1407_v18  ;;  %v3320_v61 = vpop.f32.mrb[62].mxu1  ;;  %3393 = vmatprep.mubr.bf16.mxu1 %v1626_v59 }
 0x235   :  { %v1419_v62 = vadd.f32 %v3320_v61, %v4627_v9  ;;  %v1410_v63 = vpop.f32.mrb[63].mxu1  ;;  %3394 = vmatmul.mubr.bf16.gmra.mrb[120].mxu1 %v1627_v49  ;;  %v1580_v29 = vmax.f32 %v1416_v28, 0.0 }
 0x236   :  { %v1411_v54 = vadd.f32 %v4627_v9, %v1410_v63  ;;  %v1578_v19 = vmax.f32 %v1408_v51, 0.0 }
 0x237   :  { %v1581_v0 = vmax.f32 %v1419_v62, 0.0 }
 0x238   :  { %v1579_v2 = vmax.f32 %v1411_v54, 0.0 }
 0x239   :  { %v1629_v30 = vpack.c.bf16 %v1581_v0, %v1580_v29 }
 0x23a   :  { %v1628_v1 = vpack.c.bf16 %v1579_v2, %v1578_v19 }
 0x23c   :  { %v3323_v3 = vpop.f32.mrb[64].mxu1  ;;  %3397 = vmatprep.mubr.bf16.mxu1 %v1628_v1 }
 0x23d   :  { %v1432_v20 = vadd.f32 %v3323_v3, %v4627_v9  ;;  %v1423_v4 = vpop.f32.mrb[65].mxu1  ;;  %3398 = vmatmul.mubr.bf16.gmra.mrb[124].mxu1 %v1629_v30 }
 0x23e   :  { %v1424_v5 = vadd.f32 %v4627_v9, %v1423_v4  ;;  %v3324_v7 = vpop.f32.mrb[66].mxu1 }
 0x23f   :  { %v1435_v8 = vadd.f32 %v3324_v7, %v4627_v9  ;;  %v1426_v6 = vpop.f32.mrb[67].mxu1  ;;  %v1584_v32 = vmax.f32 %v1432_v20, 0.0 }
 0x240   :  { %v1427_v40 = vadd.f32 %v4627_v9, %v1426_v6  ;;  %v1582_v21 = vmax.f32 %v1424_v5, 0.0 }
 0x241   :  { %v1585_v10 = vmax.f32 %v1435_v8, 0.0 }
 0x242   :  { %v1583_v33 = vmax.f32 %v1427_v40, 0.0 }
 0x243   :  { %v1631_v11 = vpack.c.bf16 %v1585_v10, %v1584_v32 }
 0x244   :  { %v1630_v12 = vpack.c.bf16 %v1583_v33, %v1582_v21  ;;  %v3327_v13 = vpop.f32.mrb[68].mxu1 }
 0x245   :  { %v1448_v22 = vadd.f32 %v3327_v13, %v4627_v9  ;;  %v1439_v34 = vpop.f32.mrb[69].mxu1 }
 0x246   :  { %v1440_v14 = vadd.f32 %v4627_v9, %v1439_v34  ;;  %v3328_v41 = vpop.f32.mrb[70].mxu1  ;;  %3401 = vmatprep.mubr.bf16.mxu1 %v1630_v12 }
 0x247   :  { %v1451_v42 = vadd.f32 %v3328_v41, %v4627_v9  ;;  %v1442_v35 = vpop.f32.mrb[71].mxu1  ;;  %3402 = vmatmul.mubr.bf16.gmra.mrb[128].mxu1 %v1631_v11  ;;  %v1588_v43 = vmax.f32 %v1448_v22, 0.0 }
 0x248   :  { %v1443_v31 = vadd.f32 %v4627_v9, %v1442_v35  ;;  %v1586_v44 = vmax.f32 %v1440_v14, 0.0 }
 0x249   :  { %v1589_v23 = vmax.f32 %v1451_v42, 0.0 }
 0x24a   :  { %v1587_v45 = vmax.f32 %v1443_v31, 0.0 }
 0x24b   :  { %v1633_v36 = vpack.c.bf16 %v1589_v23, %v1588_v43 }
 0x24c   :  { %v1632_v24 = vpack.c.bf16 %v1587_v45, %v1586_v44  ;;  %v3331_v47 = vpop.f32.mrb[72].mxu1 }
 0x24d   :  { %v1464_v37 = vadd.f32 %v3331_v47, %v4627_v9  ;;  %v1455_v48 = vpop.f32.mrb[73].mxu1 }
 0x24e   :  { %v1456_v15 = vadd.f32 %v4627_v9, %v1455_v48  ;;  %v3332_v50 = vpop.f32.mrb[74].mxu1  ;;  %3405 = vmatprep.mubr.bf16.mxu1 %v1632_v24 }
 0x24f   :  { %v1467_v25 = vadd.f32 %v3332_v50, %v4627_v9  ;;  %v1458_v38 = vpop.f32.mrb[75].mxu1  ;;  %3406 = vmatmul.mubr.bf16.gmra.mrb[132].mxu1 %v1633_v36  ;;  %v1592_v16 = vmax.f32 %v1464_v37, 0.0 }
 0x250   :  { %v1459_v52 = vadd.f32 %v4627_v9, %v1458_v38  ;;  %v1590_v39 = vmax.f32 %v1456_v15, 0.0 }
 0x251   :  { %v1593_v53 = vmax.f32 %v1467_v25, 0.0 }
 0x252   :  { %v1591_v26 = vmax.f32 %v1459_v52, 0.0 }
 0x253   :  { %v1635_v55 = vpack.c.bf16 %v1593_v53, %v1592_v16 }
 0x254   :  { %v1634_v56 = vpack.c.bf16 %v1591_v26, %v1590_v39  ;;  %v3335_v57 = vpop.f32.mrb[76].mxu1 }
 0x255   :  { %v1480_v17 = vadd.f32 %v3335_v57, %v4627_v9  ;;  %v1471_v46 = vpop.f32.mrb[77].mxu1 }
 0x256   :  { %v1472_v58 = vadd.f32 %v4627_v9, %v1471_v46  ;;  %v3336_v27 = vpop.f32.mrb[78].mxu1  ;;  %3409 = vmatprep.mubr.bf16.mxu1 %v1634_v56 }
 0x257   :  { %v1483_v49 = vadd.f32 %v3336_v27, %v4627_v9  ;;  %v1474_v59 = vpop.f32.mrb[79].mxu1  ;;  %3410 = vmatmul.mubr.bf16.gmra.mrb[136].mxu1 %v1635_v55  ;;  %v1596_v28 = vmax.f32 %v1480_v17, 0.0 }
 0x258   :  { %v1475_v60 = vadd.f32 %v4627_v9, %v1474_v59  ;;  %v1594_v51 = vmax.f32 %v1472_v58, 0.0 }
 0x259   :  { %v1597_v18 = vmax.f32 %v1483_v49, 0.0 }
 0x25a   :  { %v1595_v61 = vmax.f32 %v1475_v60, 0.0  ;;  %v4717_v60 = vld [vmem:[%s4869_s8] ss:$0 sm:$0xff] }
 0x25b   :  { %v1637_v62 = vpack.c.bf16 %v1597_v18, %v1596_v28 }
 0x25c   :  { %v1636_v63 = vpack.c.bf16 %v1595_v61, %v1594_v51  ;;  %v3339_v54 = vpop.f32.mrb[80].mxu1 }
 0x25d   :  { %v1496_v29 = vadd.f32 %v3339_v54, %v4627_v9  ;;  %v1487_v0 = vpop.f32.mrb[81].mxu1 }
 0x25e   :  { %v1488_v19 = vadd.f32 %v4627_v9, %v1487_v0  ;;  %v3340_v2 = vpop.f32.mrb[82].mxu1  ;;  %3413 = vmatprep.mubr.bf16.mxu1 %v1636_v63 }
 0x25f   :  { %v1499_v30 = vadd.f32 %v3340_v2, %v4627_v9  ;;  %v1490_v1 = vpop.f32.mrb[83].mxu1  ;;  %3414 = vmatmul.mubr.bf16.gmra.mrb[140].mxu1 %v1637_v62  ;;  %v1600_v20 = vmax.f32 %v1496_v29, 0.0 }
 0x260   :  { %v1491_v3 = vadd.f32 %v4627_v9, %v1490_v1  ;;  %v1598_v5 = vmax.f32 %v1488_v19, 0.0 }
 0x261   :  { %v1601_v4 = vmax.f32 %v1499_v30, 0.0 }
 0x262   :  { %v1599_v7 = vmax.f32 %v1491_v3, 0.0 }
 0x263   :  { %v1639_v8 = vpack.c.bf16 %v1601_v4, %v1600_v20 }
 0x264   :  { %v1638_v6 = vpack.c.bf16 %v1599_v7, %v1598_v5  ;;  %v3343_v40 = vpop.f32.mrb[84].mxu1 }
 0x265   :  { %v1512_v32 = vadd.f32 %v3343_v40, %v4627_v9  ;;  %v1503_v10 = vpop.f32.mrb[85].mxu1 }
 0x266   :  { %v1504_v21 = vadd.f32 %v4627_v9, %v1503_v10  ;;  %v3344_v33 = vpop.f32.mrb[86].mxu1  ;;  %3417 = vmatprep.mubr.bf16.mxu1 %v1638_v6 }
 0x267   :  { %v1515_v11 = vadd.f32 %v3344_v33, %v4627_v9  ;;  %v1506_v12 = vpop.f32.mrb[87].mxu1  ;;  %3418 = vmatmul.mubr.bf16.gmra.mrb[144].mxu1 %v1639_v8  ;;  %v1604_v22 = vmax.f32 %v1512_v32, 0.0 }
 0x268   :  { %v1507_v13 = vadd.f32 %v4627_v9, %v1506_v12  ;;  %v1602_v14 = vmax.f32 %v1504_v21, 0.0 }
 0x269   :  { %v1605_v34 = vmax.f32 %v1515_v11, 0.0 }
 0x26a   :  { %v1603_v41 = vmax.f32 %v1507_v13, 0.0 }
 0x26b   :  { %v1641_v42 = vpack.c.bf16 %v1605_v34, %v1604_v22 }
 0x26c   :  { %v1640_v35 = vpack.c.bf16 %v1603_v41, %v1602_v14  ;;  %v3347_v31 = vpop.f32.mrb[88].mxu1 }
 0x26d   :  { %v1528_v43 = vadd.f32 %v3347_v31, %v4627_v9  ;;  %v1519_v23 = vpop.f32.mrb[89].mxu1 }
 0x26e   :  { %v1520_v44 = vadd.f32 %v4627_v9, %v1519_v23  ;;  %v3348_v45 = vpop.f32.mrb[90].mxu1  ;;  %3421 = vmatprep.mubr.bf16.mxu1 %v1640_v35 }
 0x26f   :  { %v1531_v36 = vadd.f32 %v3348_v45, %v4627_v9  ;;  %v1522_v24 = vpop.f32.mrb[91].mxu1  ;;  %3422 = vmatmul.mubr.bf16.gmra.mrb[148].mxu1 %v1641_v42  ;;  %v1608_v37 = vmax.f32 %v1528_v43, 0.0 }
 0x270   :  { %v1523_v47 = vadd.f32 %v4627_v9, %v1522_v24  ;;  %v1606_v15 = vmax.f32 %v1520_v44, 0.0 }
 0x271   :  { %v1609_v48 = vmax.f32 %v1531_v36, 0.0 }
 0x272   :  { %v1607_v50 = vmax.f32 %v1523_v47, 0.0 }
 0x273   :  { %v1643_v25 = vpack.c.bf16 %v1609_v48, %v1608_v37 }
 0x274   :  { %v1642_v38 = vpack.c.bf16 %v1607_v50, %v1606_v15  ;;  %v3351_v52 = vpop.f32.mrb[92].mxu1 }
 0x275   :  { %v1544_v16 = vadd.f32 %v3351_v52, %v4627_v9  ;;  %v1535_v53 = vpop.f32.mrb[93].mxu1 }
 0x276   :  { %v1536_v39 = vadd.f32 %v4627_v9, %v1535_v53  ;;  %v3352_v26 = vpop.f32.mrb[94].mxu1  ;;  %3425 = vmatprep.mubr.bf16.mxu1 %v1642_v38 }
 0x277   :  { %v1547_v55 = vadd.f32 %v3352_v26, %v4627_v9  ;;  %v1538_v56 = vpop.f32.mrb[95].mxu1  ;;  %3426 = vmatmul.mubr.bf16.gmra.mrb[152].mxu1 %v1643_v25  ;;  %v1612_v17 = vmax.f32 %v1544_v16, 0.0 }
 0x278   :  { %v1539_v57 = vadd.f32 %v4627_v9, %v1538_v56  ;;  %v1610_v58 = vmax.f32 %v1536_v39, 0.0 }
 0x279   :  { %v1613_v46 = vmax.f32 %v1547_v55, 0.0 }
 0x27a   :  { %v1611_v27 = vmax.f32 %v1539_v57, 0.0 }
 0x27b   :  { %v1645_v49 = vpack.c.bf16 %v1613_v46, %v1612_v17 }
 0x27c   :  { %v1644_v59 = vpack.c.bf16 %v1611_v27, %v1610_v58 }
 0x27e   :  { %3429 = vmatprep.mubr.bf16.mxu1 %v1644_v59 }
 0x27f   :  { %3430 = vmatmul.mubr.bf16.gmra.mrb[156].mxu1 %v1645_v49 }
 0x2d8   :  { %v3371_v28 = vpop.f32.mrb[96].mxu1 }
 0x2d9   :  { %v1760_v18 = vadd.f32 %v3371_v28, %v4717_v60  ;;  %v1751_v51 = vpop.f32.mrb[97].mxu1 }
 0x2da   :  { %v1752_v61 = vadd.f32 %v4717_v60, %v1751_v51  ;;  %v3372_v9 = vpop.f32.mrb[98].mxu1 }
 0x2db   :  { %v1763_v62 = vadd.f32 %v3372_v9, %v4717_v60  ;;  %v1754_v63 = vpop.f32.mrb[99].mxu1  ;;  %v2008_v29 = vmax.f32 %v1760_v18, 0.0 }
 0x2dc   :  { %v1755_v54 = vadd.f32 %v4717_v60, %v1754_v63  ;;  %v2006_v19 = vmax.f32 %v1752_v61, 0.0 }
 0x2dd   :  { %v2009_v0 = vmax.f32 %v1763_v62, 0.0 }
 0x2de   :  { %v2007_v2 = vmax.f32 %v1755_v54, 0.0 }
 0x2df   :  { %v2071_v30 = vpack.c.bf16 %v2009_v0, %v2008_v29 }
 0x2e0   :  { %v2070_v1 = vpack.c.bf16 %v2007_v2, %v2006_v19  ;;  %v3375_v3 = vpop.f32.mrb[100].mxu1 }
 0x2e1   :  { %v1776_v20 = vadd.f32 %v3375_v3, %v4717_v60  ;;  %v1767_v4 = vpop.f32.mrb[101].mxu1 }
 0x2e2   :  { %v1768_v5 = vadd.f32 %v4717_v60, %v1767_v4  ;;  %v3376_v7 = vpop.f32.mrb[102].mxu1  ;;  %3449 = vmatprep.mubr.bf16.mxu0 %v2070_v1 }
 0x2e3   :  { %v1779_v8 = vadd.f32 %v3376_v7, %v4717_v60  ;;  %v1770_v6 = vpop.f32.mrb[103].mxu1  ;;  %3450 = vmatmul.mubr.bf16.vlgmr.msra.gmra.mrb[64].mxu0 %v2071_v30  ;;  %v2012_v32 = vmax.f32 %v1776_v20, 0.0 }
 0x2e4   :  { %v1771_v40 = vadd.f32 %v4717_v60, %v1770_v6  ;;  %v2010_v21 = vmax.f32 %v1768_v5, 0.0 }
 0x2e5   :  { %v2013_v10 = vmax.f32 %v1779_v8, 0.0 }
 0x2e6   :  { %v2011_v33 = vmax.f32 %v1771_v40, 0.0 }
 0x2e7   :  { %v2073_v11 = vpack.c.bf16 %v2013_v10, %v2012_v32 }
 0x2e8   :  { %v2072_v12 = vpack.c.bf16 %v2011_v33, %v2010_v21  ;;  %v3379_v13 = vpop.f32.mrb[104].mxu1 }
 0x2e9   :  { %v1792_v22 = vadd.f32 %v3379_v13, %v4717_v60  ;;  %v1783_v34 = vpop.f32.mrb[105].mxu1 }
 0x2ea   :  { %v1784_v14 = vadd.f32 %v4717_v60, %v1783_v34  ;;  %v3380_v41 = vpop.f32.mrb[106].mxu1  ;;  %3453 = vmatprep.mubr.bf16.mxu0 %v2072_v12 }
 0x2eb   :  { %v1795_v42 = vadd.f32 %v3380_v41, %v4717_v60  ;;  %v1786_v35 = vpop.f32.mrb[107].mxu1  ;;  %3454 = vmatmul.mubr.bf16.gmra.mrb[68].mxu0 %v2073_v11  ;;  %v2016_v43 = vmax.f32 %v1792_v22, 0.0 }
 0x2ec   :  { %v1787_v31 = vadd.f32 %v4717_v60, %v1786_v35  ;;  %v2014_v44 = vmax.f32 %v1784_v14, 0.0 }
 0x2ed   :  { %v2017_v23 = vmax.f32 %v1795_v42, 0.0 }
 0x2ee   :  { %v2015_v45 = vmax.f32 %v1787_v31, 0.0 }
 0x2ef   :  { %v2075_v36 = vpack.c.bf16 %v2017_v23, %v2016_v43 }
 0x2f0   :  { %v2074_v24 = vpack.c.bf16 %v2015_v45, %v2014_v44  ;;  %v3383_v47 = vpop.f32.mrb[108].mxu1 }
 0x2f1   :  { %v1808_v37 = vadd.f32 %v3383_v47, %v4717_v60  ;;  %v1799_v48 = vpop.f32.mrb[109].mxu1 }
 0x2f2   :  { %v1800_v15 = vadd.f32 %v4717_v60, %v1799_v48  ;;  %v3384_v50 = vpop.f32.mrb[110].mxu1  ;;  %3457 = vmatprep.mubr.bf16.mxu0 %v2074_v24 }
 0x2f3   :  { %v1811_v25 = vadd.f32 %v3384_v50, %v4717_v60  ;;  %v1802_v38 = vpop.f32.mrb[111].mxu1  ;;  %3458 = vmatmul.mubr.bf16.gmra.mrb[72].mxu0 %v2075_v36  ;;  %v2020_v16 = vmax.f32 %v1808_v37, 0.0 }
 0x2f4   :  { %v1803_v52 = vadd.f32 %v4717_v60, %v1802_v38  ;;  %v2018_v39 = vmax.f32 %v1800_v15, 0.0 }
 0x2f5   :  { %v2021_v53 = vmax.f32 %v1811_v25, 0.0 }
 0x2f6   :  { %v2019_v26 = vmax.f32 %v1803_v52, 0.0 }
 0x2f7   :  { %v2077_v55 = vpack.c.bf16 %v2021_v53, %v2020_v16 }
 0x2f8   :  { %v2076_v56 = vpack.c.bf16 %v2019_v26, %v2018_v39  ;;  %v3387_v57 = vpop.f32.mrb[112].mxu1 }
 0x2f9   :  { %v1824_v17 = vadd.f32 %v3387_v57, %v4717_v60  ;;  %v1815_v46 = vpop.f32.mrb[113].mxu1 }
 0x2fa   :  { %v1816_v58 = vadd.f32 %v4717_v60, %v1815_v46  ;;  %v3388_v27 = vpop.f32.mrb[114].mxu1  ;;  %3461 = vmatprep.mubr.bf16.mxu0 %v2076_v56 }
 0x2fb   :  { %v1827_v49 = vadd.f32 %v3388_v27, %v4717_v60  ;;  %v1818_v59 = vpop.f32.mrb[115].mxu1  ;;  %3462 = vmatmul.mubr.bf16.gmra.mrb[76].mxu0 %v2077_v55  ;;  %v2024_v18 = vmax.f32 %v1824_v17, 0.0 }
 0x2fc   :  { %v1819_v28 = vadd.f32 %v4717_v60, %v1818_v59  ;;  %v2022_v61 = vmax.f32 %v1816_v58, 0.0 }
 0x2fd   :  { %v2025_v51 = vmax.f32 %v1827_v49, 0.0 }
 0x2fe   :  { %v2023_v9 = vmax.f32 %v1819_v28, 0.0 }
 0x2ff   :  { %v2079_v62 = vpack.c.bf16 %v2025_v51, %v2024_v18 }
 0x300   :  { %v2078_v63 = vpack.c.bf16 %v2023_v9, %v2022_v61  ;;  %v3391_v54 = vpop.f32.mrb[116].mxu1 }
 0x301   :  { %v1840_v29 = vadd.f32 %v3391_v54, %v4717_v60  ;;  %v1831_v0 = vpop.f32.mrb[117].mxu1 }
 0x302   :  { %v1832_v19 = vadd.f32 %v4717_v60, %v1831_v0  ;;  %v3392_v2 = vpop.f32.mrb[118].mxu1  ;;  %3465 = vmatprep.mubr.bf16.mxu0 %v2078_v63 }
 0x303   :  { %v1843_v30 = vadd.f32 %v3392_v2, %v4717_v60  ;;  %v1834_v1 = vpop.f32.mrb[119].mxu1  ;;  %3466 = vmatmul.mubr.bf16.gmra.mrb[80].mxu0 %v2079_v62  ;;  %v2028_v20 = vmax.f32 %v1840_v29, 0.0 }
 0x304   :  { %v1835_v3 = vadd.f32 %v4717_v60, %v1834_v1  ;;  %v2026_v5 = vmax.f32 %v1832_v19, 0.0 }
 0x305   :  { %v2029_v4 = vmax.f32 %v1843_v30, 0.0 }
 0x306   :  { %v2027_v7 = vmax.f32 %v1835_v3, 0.0 }
 0x307   :  { %v2081_v8 = vpack.c.bf16 %v2029_v4, %v2028_v20 }
 0x308   :  { %v2080_v6 = vpack.c.bf16 %v2027_v7, %v2026_v5  ;;  %v3395_v40 = vpop.f32.mrb[120].mxu1 }
 0x309   :  { %v1856_v32 = vadd.f32 %v3395_v40, %v4717_v60  ;;  %v1847_v10 = vpop.f32.mrb[121].mxu1 }
 0x30a   :  { %v1848_v21 = vadd.f32 %v4717_v60, %v1847_v10  ;;  %v3396_v33 = vpop.f32.mrb[122].mxu1  ;;  %3469 = vmatprep.mubr.bf16.mxu0 %v2080_v6 }
 0x30b   :  { %v1859_v11 = vadd.f32 %v3396_v33, %v4717_v60  ;;  %v1850_v12 = vpop.f32.mrb[123].mxu1  ;;  %3470 = vmatmul.mubr.bf16.gmra.mrb[84].mxu0 %v2081_v8  ;;  %v2032_v22 = vmax.f32 %v1856_v32, 0.0 }
 0x30c   :  { %v1851_v13 = vadd.f32 %v4717_v60, %v1850_v12  ;;  %v2030_v14 = vmax.f32 %v1848_v21, 0.0 }
 0x30d   :  { %v2033_v34 = vmax.f32 %v1859_v11, 0.0 }
 0x30e   :  { %v2031_v41 = vmax.f32 %v1851_v13, 0.0 }
 0x30f   :  { %v2083_v42 = vpack.c.bf16 %v2033_v34, %v2032_v22 }
 0x310   :  { %v2082_v35 = vpack.c.bf16 %v2031_v41, %v2030_v14  ;;  %v3399_v31 = vpop.f32.mrb[124].mxu1 }
 0x311   :  { %v1872_v43 = vadd.f32 %v3399_v31, %v4717_v60  ;;  %v1863_v23 = vpop.f32.mrb[125].mxu1 }
 0x312   :  { %v1864_v44 = vadd.f32 %v4717_v60, %v1863_v23  ;;  %v3400_v45 = vpop.f32.mrb[126].mxu1  ;;  %3473 = vmatprep.mubr.bf16.mxu0 %v2082_v35 }
 0x313   :  { %v1875_v36 = vadd.f32 %v3400_v45, %v4717_v60  ;;  %v1866_v24 = vpop.f32.mrb[127].mxu1  ;;  %3474 = vmatmul.mubr.bf16.gmra.mrb[88].mxu0 %v2083_v42  ;;  %v2036_v37 = vmax.f32 %v1872_v43, 0.0 }
 0x314   :  { %v1867_v47 = vadd.f32 %v4717_v60, %v1866_v24  ;;  %v2034_v15 = vmax.f32 %v1864_v44, 0.0 }
 0x315   :  { %v2037_v48 = vmax.f32 %v1875_v36, 0.0 }
 0x316   :  { %v2035_v50 = vmax.f32 %v1867_v47, 0.0 }
 0x317   :  { %v2085_v25 = vpack.c.bf16 %v2037_v48, %v2036_v37 }
 0x318   :  { %v2084_v38 = vpack.c.bf16 %v2035_v50, %v2034_v15 }
 0x31a   :  { %v3403_v52 = vpop.f32.mrb[128].mxu1  ;;  %3477 = vmatprep.mubr.bf16.mxu0 %v2084_v38 }
 0x31b   :  { %v1888_v16 = vadd.f32 %v3403_v52, %v4717_v60  ;;  %v1879_v53 = vpop.f32.mrb[129].mxu1  ;;  %3478 = vmatmul.mubr.bf16.gmra.mrb[92].mxu0 %v2085_v25 }
 0x31c   :  { %v1880_v39 = vadd.f32 %v4717_v60, %v1879_v53  ;;  %v3404_v26 = vpop.f32.mrb[130].mxu1 }
 0x31d   :  { %v1891_v55 = vadd.f32 %v3404_v26, %v4717_v60  ;;  %v1882_v56 = vpop.f32.mrb[131].mxu1  ;;  %v2040_v17 = vmax.f32 %v1888_v16, 0.0 }
 0x31e   :  { %v1883_v57 = vadd.f32 %v4717_v60, %v1882_v56  ;;  %v2038_v58 = vmax.f32 %v1880_v39, 0.0 }
 0x31f   :  { %v2041_v46 = vmax.f32 %v1891_v55, 0.0 }
 0x320   :  { %v2039_v27 = vmax.f32 %v1883_v57, 0.0 }
 0x321   :  { %v2087_v49 = vpack.c.bf16 %v2041_v46, %v2040_v17 }
 0x322   :  { %v2086_v59 = vpack.c.bf16 %v2039_v27, %v2038_v58  ;;  %v3407_v28 = vpop.f32.mrb[132].mxu1 }
 0x323   :  { %v1904_v18 = vadd.f32 %v3407_v28, %v4717_v60  ;;  %v1895_v51 = vpop.f32.mrb[133].mxu1 }
 0x324   :  { %v1896_v61 = vadd.f32 %v4717_v60, %v1895_v51  ;;  %v3408_v9 = vpop.f32.mrb[134].mxu1  ;;  %3481 = vmatprep.mubr.bf16.mxu0 %v2086_v59 }
 0x325   :  { %v1907_v62 = vadd.f32 %v3408_v9, %v4717_v60  ;;  %v1898_v63 = vpop.f32.mrb[135].mxu1  ;;  %3482 = vmatmul.mubr.bf16.gmra.mrb[96].mxu0 %v2087_v49  ;;  %v2044_v29 = vmax.f32 %v1904_v18, 0.0 }
 0x326   :  { %v1899_v54 = vadd.f32 %v4717_v60, %v1898_v63  ;;  %v2042_v19 = vmax.f32 %v1896_v61, 0.0 }
 0x327   :  { %v2045_v0 = vmax.f32 %v1907_v62, 0.0 }
 0x328   :  { %v2043_v2 = vmax.f32 %v1899_v54, 0.0 }
 0x329   :  { %v2089_v30 = vpack.c.bf16 %v2045_v0, %v2044_v29 }
 0x32a   :  { %v2088_v1 = vpack.c.bf16 %v2043_v2, %v2042_v19  ;;  %v3411_v3 = vpop.f32.mrb[136].mxu1 }
 0x32b   :  { %v1920_v20 = vadd.f32 %v3411_v3, %v4717_v60  ;;  %v1911_v4 = vpop.f32.mrb[137].mxu1 }
 0x32c   :  { %v1912_v5 = vadd.f32 %v4717_v60, %v1911_v4  ;;  %v3412_v7 = vpop.f32.mrb[138].mxu1  ;;  %3485 = vmatprep.mubr.bf16.mxu0 %v2088_v1 }
 0x32d   :  { %v1923_v8 = vadd.f32 %v3412_v7, %v4717_v60  ;;  %v1914_v6 = vpop.f32.mrb[139].mxu1  ;;  %3486 = vmatmul.mubr.bf16.gmra.mrb[100].mxu0 %v2089_v30  ;;  %v2048_v32 = vmax.f32 %v1920_v20, 0.0 }
 0x32e   :  { %v1915_v40 = vadd.f32 %v4717_v60, %v1914_v6  ;;  %v2046_v21 = vmax.f32 %v1912_v5, 0.0 }
 0x32f   :  { %v2049_v10 = vmax.f32 %v1923_v8, 0.0 }
 0x330   :  { %v2047_v33 = vmax.f32 %v1915_v40, 0.0 }
 0x331   :  { %v2091_v11 = vpack.c.bf16 %v2049_v10, %v2048_v32 }
 0x332   :  { %v2090_v12 = vpack.c.bf16 %v2047_v33, %v2046_v21  ;;  %v3415_v13 = vpop.f32.mrb[140].mxu1 }
 0x333   :  { %v1936_v22 = vadd.f32 %v3415_v13, %v4717_v60  ;;  %v1927_v34 = vpop.f32.mrb[141].mxu1 }
 0x334   :  { %v1928_v14 = vadd.f32 %v4717_v60, %v1927_v34  ;;  %v3416_v41 = vpop.f32.mrb[142].mxu1  ;;  %3489 = vmatprep.mubr.bf16.mxu0 %v2090_v12 }
 0x335   :  { %v1939_v42 = vadd.f32 %v3416_v41, %v4717_v60  ;;  %v1930_v35 = vpop.f32.mrb[143].mxu1  ;;  %3490 = vmatmul.mubr.bf16.gmra.mrb[104].mxu0 %v2091_v11  ;;  %v2052_v43 = vmax.f32 %v1936_v22, 0.0 }
 0x336   :  { %v1931_v31 = vadd.f32 %v4717_v60, %v1930_v35  ;;  %v2050_v44 = vmax.f32 %v1928_v14, 0.0 }
 0x337   :  { %v2053_v23 = vmax.f32 %v1939_v42, 0.0 }
 0x338   :  { %v2051_v45 = vmax.f32 %v1931_v31, 0.0  ;;  %v4786_v31 = vld [vmem:[%s4871_s10] ss:$0 sm:$0xff] }
 0x339   :  { %v2093_v36 = vpack.c.bf16 %v2053_v23, %v2052_v43 }
 0x33a   :  { %v2092_v24 = vpack.c.bf16 %v2051_v45, %v2050_v44  ;;  %v3419_v47 = vpop.f32.mrb[144].mxu1 }
 0x33b   :  { %v1952_v37 = vadd.f32 %v3419_v47, %v4717_v60  ;;  %v1943_v48 = vpop.f32.mrb[145].mxu1 }
 0x33c   :  { %v1944_v15 = vadd.f32 %v4717_v60, %v1943_v48  ;;  %v3420_v50 = vpop.f32.mrb[146].mxu1  ;;  %3493 = vmatprep.mubr.bf16.mxu0 %v2092_v24 }
 0x33d   :  { %v1955_v25 = vadd.f32 %v3420_v50, %v4717_v60  ;;  %v1946_v38 = vpop.f32.mrb[147].mxu1  ;;  %3494 = vmatmul.mubr.bf16.gmra.mrb[108].mxu0 %v2093_v36  ;;  %v2056_v16 = vmax.f32 %v1952_v37, 0.0 }
 0x33e   :  { %v1947_v52 = vadd.f32 %v4717_v60, %v1946_v38  ;;  %v2054_v39 = vmax.f32 %v1944_v15, 0.0 }
 0x33f   :  { %v2057_v53 = vmax.f32 %v1955_v25, 0.0 }
 0x340   :  { %v2055_v26 = vmax.f32 %v1947_v52, 0.0 }
 0x341   :  { %v2095_v55 = vpack.c.bf16 %v2057_v53, %v2056_v16 }
 0x342   :  { %v2094_v56 = vpack.c.bf16 %v2055_v26, %v2054_v39  ;;  %v3423_v57 = vpop.f32.mrb[148].mxu1 }
 0x343   :  { %v1968_v17 = vadd.f32 %v3423_v57, %v4717_v60  ;;  %v1959_v46 = vpop.f32.mrb[149].mxu1 }
 0x344   :  { %v1960_v58 = vadd.f32 %v4717_v60, %v1959_v46  ;;  %v3424_v27 = vpop.f32.mrb[150].mxu1  ;;  %3497 = vmatprep.mubr.bf16.mxu0 %v2094_v56 }
 0x345   :  { %v1971_v49 = vadd.f32 %v3424_v27, %v4717_v60  ;;  %v1962_v59 = vpop.f32.mrb[151].mxu1  ;;  %3498 = vmatmul.mubr.bf16.gmra.mrb[112].mxu0 %v2095_v55  ;;  %v2060_v18 = vmax.f32 %v1968_v17, 0.0 }
 0x346   :  { %v1963_v28 = vadd.f32 %v4717_v60, %v1962_v59  ;;  %v2058_v61 = vmax.f32 %v1960_v58, 0.0 }
 0x347   :  { %v2061_v51 = vmax.f32 %v1971_v49, 0.0 }
 0x348   :  { %v2059_v9 = vmax.f32 %v1963_v28, 0.0 }
 0x349   :  { %v2097_v62 = vpack.c.bf16 %v2061_v51, %v2060_v18 }
 0x34a   :  { %v2096_v63 = vpack.c.bf16 %v2059_v9, %v2058_v61  ;;  %v3427_v54 = vpop.f32.mrb[152].mxu1 }
 0x34b   :  { %v1984_v29 = vadd.f32 %v3427_v54, %v4717_v60  ;;  %v1975_v0 = vpop.f32.mrb[153].mxu1 }
 0x34c   :  { %v1976_v19 = vadd.f32 %v4717_v60, %v1975_v0  ;;  %v3428_v2 = vpop.f32.mrb[154].mxu1  ;;  %3501 = vmatprep.mubr.bf16.mxu0 %v2096_v63 }
 0x34d   :  { %v1987_v30 = vadd.f32 %v3428_v2, %v4717_v60  ;;  %v1978_v1 = vpop.f32.mrb[155].mxu1  ;;  %3502 = vmatmul.mubr.bf16.gmra.mrb[116].mxu0 %v2097_v62  ;;  %v2064_v20 = vmax.f32 %v1984_v29, 0.0 }
 0x34e   :  { %v1979_v3 = vadd.f32 %v4717_v60, %v1978_v1  ;;  %v2062_v5 = vmax.f32 %v1976_v19, 0.0 }
 0x34f   :  { %v2065_v4 = vmax.f32 %v1987_v30, 0.0 }
 0x350   :  { %v2063_v7 = vmax.f32 %v1979_v3, 0.0 }
 0x351   :  { %v2099_v8 = vpack.c.bf16 %v2065_v4, %v2064_v20 }
 0x352   :  { %v2098_v6 = vpack.c.bf16 %v2063_v7, %v2062_v5  ;;  %v3431_v40 = vpop.f32.mrb[156].mxu1 }
 0x353   :  { %v2000_v32 = vadd.f32 %v3431_v40, %v4717_v60  ;;  %v1991_v10 = vpop.f32.mrb[157].mxu1 }
 0x354   :  { %v1992_v21 = vadd.f32 %v4717_v60, %v1991_v10  ;;  %v3432_v33 = vpop.f32.mrb[158].mxu1  ;;  %3505 = vmatprep.mubr.bf16.mxu0 %v2098_v6 }
 0x355   :  { %v2003_v11 = vadd.f32 %v3432_v33, %v4717_v60  ;;  %v1994_v12 = vpop.f32.mrb[159].mxu1  ;;  %3506 = vmatmul.mubr.bf16.gmra.mrb[120].mxu0 %v2099_v8  ;;  %v2068_v22 = vmax.f32 %v2000_v32, 0.0 }
 0x356   :  { %v1995_v13 = vadd.f32 %v4717_v60, %v1994_v12  ;;  %v2066_v14 = vmax.f32 %v1992_v21, 0.0 }
 0x357   :  { %v2069_v34 = vmax.f32 %v2003_v11, 0.0 }
 0x358   :  { %v2067_v41 = vmax.f32 %v1995_v13, 0.0 }
 0x359   :  { %v2101_v42 = vpack.c.bf16 %v2069_v34, %v2068_v22 }
 0x35a   :  { %v2100_v35 = vpack.c.bf16 %v2067_v41, %v2066_v14 }
 0x35c   :  { %3509 = vmatprep.mubr.bf16.mxu0 %v2100_v35 }
 0x35d   :  { %3510 = vmatmul.mubr.bf16.gmra.mrb[124].mxu0 %v2101_v42 }
 0x3b6   :  { %v3451_v43 = vpop.f32.mrb[64].mxu0 }
 0x3b7   :  { %v2216_v23 = vadd.f32 %v3451_v43, %v4786_v31  ;;  %v2207_v44 = vpop.f32.mrb[65].mxu0 }
 0x3b8   :  { %v2208_v45 = vadd.f32 %v4786_v31, %v2207_v44  ;;  %v3452_v60 = vpop.f32.mrb[66].mxu0 }
 0x3b9   :  { %v2464_v36 = vsub.f32 0.0, %v2216_v23  ;;  %v2219_v24 = vadd.f32 %v3452_v60, %v4786_v31  ;;  %v2210_v47 = vpop.f32.mrb[67].mxu0 }
 0x3ba   :  { %v2462_v37 = vsub.f32 0.0, %v2208_v45  ;;  %v2211_v48 = vadd.f32 %v4786_v31, %v2210_v47 }
 0x3bb   :  { %v2530_v15 = vmul.f32 1.442695, %v2464_v36  ;;  %v2465_v50 = vsub.f32 0.0, %v2219_v24 }
 0x3bc   :  { %v2526_v25 = vmul.f32 1.442695, %v2462_v37  ;;  %v2463_v38 = vsub.f32 0.0, %v2211_v48 }
 0x3bd   :  { %3609 = vpow2.f32 %v2530_v15  ;;  %v2532_v52 = vmul.f32 1.442695, %v2465_v50 }
 0x3be   :  { %3611 = vpow2.f32 %v2526_v25  ;;  %v2528_v16 = vmul.f32 1.442695, %v2463_v38  ;;  %v3455_v53 = vpop.f32.mrb[68].mxu0 }
 0x3bf   :  { %3613 = vpow2.f32 %v2532_v52  ;;  %v2232_v39 = vadd.f32 %v3455_v53, %v4786_v31  ;;  %v2223_v26 = vpop.f32.mrb[69].mxu0 }
 0x3c0   :  { %3615 = vpow2.f32 %v2528_v16  ;;  %v2224_v55 = vadd.f32 %v4786_v31, %v2223_v26  ;;  %v3456_v56 = vpop.f32.mrb[70].mxu0 }
 0x3c1   :  { %v2468_v57 = vsub.f32 0.0, %v2232_v39  ;;  %v2235_v17 = vadd.f32 %v3456_v56, %v4786_v31  ;;  %v2226_v46 = vpop.f32.mrb[71].mxu0 }
 0x3c2   :  { %v2466_v58 = vsub.f32 0.0, %v2224_v55  ;;  %v2227_v27 = vadd.f32 %v4786_v31, %v2226_v46 }
 0x3c3   :  { %v2538_v49 = vmul.f32 1.442695, %v2468_v57  ;;  %v2469_v59 = vsub.f32 0.0, %v2235_v17 }
 0x3c4   :  { %v2534_v28 = vmul.f32 1.442695, %v2466_v58  ;;  %v2467_v18 = vsub.f32 0.0, %v2227_v27 }
 0x3c5   :  { %3617 = vpow2.f32 %v2538_v49  ;;  %v2540_v51 = vmul.f32 1.442695, %v2469_v59 }
 0x3c6   :  { %3619 = vpow2.f32 %v2534_v28  ;;  %v2536_v61 = vmul.f32 1.442695, %v2467_v18  ;;  %v3459_v9 = vpop.f32.mrb[72].mxu0 }
 0x3c7   :  { %v3610_v62 = vpop.eup %3609  ;;  %3621 = vpow2.f32 %v2540_v51  ;;  %v2248_v63 = vadd.f32 %v3459_v9, %v4786_v31  ;;  %v2239_v54 = vpop.f32.mrb[73].mxu0 }
 0x3c8   :  { %v3612_v29 = vpop.eup %3611  ;;  %v2656_v0 = vadd.f32 1.0, %v3610_v62  ;;  %3623 = vpow2.f32 %v2536_v61  ;;  %v2240_v19 = vadd.f32 %v4786_v31, %v2239_v54  ;;  %v3460_v2 = vpop.f32.mrb[74].mxu0 }
 0x3c9   :  { %v3614_v30 = vpop.eup %3613  ;;  %v2654_v1 = vadd.f32 1.0, %v3612_v29  ;;  %v2472_v3 = vsub.f32 0.0, %v2248_v63  ;;  %v2251_v20 = vadd.f32 %v3460_v2, %v4786_v31  ;;  %v2242_v4 = vpop.f32.mrb[75].mxu0 }
 0x3ca   :  { %v3616_v5 = vpop.eup %3615  ;;  %3625 = vrcp.f32 %v2656_v0  ;;  %v2657_v7 = vadd.f32 1.0, %v3614_v30  ;;  %v2470_v8 = vsub.f32 0.0, %v2240_v19  ;;  %v2243_v6 = vadd.f32 %v4786_v31, %v2242_v4 }
 0x3cb   :  { %3627 = vrcp.f32 %v2654_v1  ;;  %v2655_v40 = vadd.f32 1.0, %v3616_v5  ;;  %v2546_v32 = vmul.f32 1.442695, %v2472_v3  ;;  %v2473_v10 = vsub.f32 0.0, %v2251_v20 }
 0x3cc   :  { %3629 = vrcp.f32 %v2657_v7  ;;  %v2542_v21 = vmul.f32 1.442695, %v2470_v8  ;;  %v2471_v33 = vsub.f32 0.0, %v2243_v6 }
 0x3cd   :  { %3631 = vrcp.f32 %v2655_v40  ;;  %v2548_v11 = vmul.f32 1.442695, %v2473_v10 }
 0x3ce   :  { %3633 = vpow2.f32 %v2546_v32  ;;  %v2544_v12 = vmul.f32 1.442695, %v2471_v33  ;;  %v3463_v13 = vpop.f32.mrb[76].mxu0 }
 0x3cf   :  { %v3618_v22 = vpop.eup %3617  ;;  %3635 = vpow2.f32 %v2542_v21  ;;  %v2264_v34 = vadd.f32 %v3463_v13, %v4786_v31  ;;  %v2255_v14 = vpop.f32.mrb[77].mxu0 }
 0x3d0   :  { %v3620_v41 = vpop.eup %3619  ;;  %v2660_v42 = vadd.f32 1.0, %v3618_v22  ;;  %3637 = vpow2.f32 %v2548_v11  ;;  %v2256_v35 = vadd.f32 %v4786_v31, %v2255_v14  ;;  %v3464_v43 = vpop.f32.mrb[78].mxu0 }
 0x3d1   :  { %v3622_v23 = vpop.eup %3621  ;;  %v2658_v44 = vadd.f32 1.0, %v3620_v41  ;;  %3639 = vpow2.f32 %v2544_v12  ;;  %v2476_v45 = vsub.f32 0.0, %v2264_v34  ;;  %v2267_v60 = vadd.f32 %v3464_v43, %v4786_v31  ;;  %v2258_v36 = vpop.f32.mrb[79].mxu0 }
 0x3d2   :  { %v3624_v24 = vpop.eup %3623  ;;  %3641 = vrcp.f32 %v2660_v42  ;;  %v2661_v47 = vadd.f32 1.0, %v3622_v23  ;;  %v2474_v37 = vsub.f32 0.0, %v2256_v35  ;;  %v2259_v48 = vadd.f32 %v4786_v31, %v2258_v36 }
 0x3d3   :  { %3643 = vrcp.f32 %v2658_v44  ;;  %v2659_v15 = vadd.f32 1.0, %v3624_v24  ;;  %v2554_v50 = vmul.f32 1.442695, %v2476_v45  ;;  %v2477_v25 = vsub.f32 0.0, %v2267_v60 }
 0x3d4   :  { %v3626_v38 = vpop.eup %3625  ;;  %3645 = vrcp.f32 %v2661_v47  ;;  %v2550_v52 = vmul.f32 1.442695, %v2474_v37  ;;  %v2475_v16 = vsub.f32 0.0, %v2259_v48 }
 0x3d5   :  { %v3628_v53 = vpop.eup %3627  ;;  %2784 = vst [vmem:[#allocation2 + $0x10] sm:$0xff] %v3626_v38  ;;  %3647 = vrcp.f32 %v2659_v15  ;;  %v2556_v39 = vmul.f32 1.442695, %v2477_v25 }
 0x3d6   :  { %v3630_v26 = vpop.eup %3629  ;;  %2782 = vst [vmem:[#allocation2] sm:$0xff] %v3628_v53  ;;  %3649 = vpow2.f32 %v2554_v50  ;;  %v2552_v55 = vmul.f32 1.442695, %v2475_v16  ;;  %v3467_v56 = vpop.f32.mrb[80].mxu0 }
 0x3d7   :  { %v3632_v57 = vpop.eup %3631  ;;  %2785 = vst [vmem:[#allocation2 + $0x18] sm:$0xff] %v3630_v26  ;;  %3651 = vpow2.f32 %v2550_v52  ;;  %v2280_v17 = vadd.f32 %v3467_v56, %v4786_v31  ;;  %v2271_v46 = vpop.f32.mrb[81].mxu0 }
 0x3d8   :  { %v3634_v58 = vpop.eup %3633  ;;  %2783 = vst [vmem:[#allocation2 + $0x8] sm:$0xff] %v3632_v57  ;;  %3653 = vpow2.f32 %v2556_v39  ;;  %v2272_v27 = vadd.f32 %v4786_v31, %v2271_v46  ;;  %v3468_v49 = vpop.f32.mrb[82].mxu0 }
 0x3d9   :  { %v3636_v59 = vpop.eup %3635  ;;  %v2664_v28 = vadd.f32 1.0, %v3634_v58  ;;  %3655 = vpow2.f32 %v2552_v55  ;;  %v2480_v18 = vsub.f32 0.0, %v2280_v17  ;;  %v2283_v51 = vadd.f32 %v3468_v49, %v4786_v31  ;;  %v2274_v61 = vpop.f32.mrb[83].mxu0 }
 0x3da   :  { %v3638_v9 = vpop.eup %3637  ;;  %v2662_v62 = vadd.f32 1.0, %v3636_v59  ;;  %v2478_v63 = vsub.f32 0.0, %v2272_v27  ;;  %v2275_v54 = vadd.f32 %v4786_v31, %v2274_v61 }
 0x3db   :  { %v3640_v29 = vpop.eup %3639  ;;  %3657 = vrcp.f32 %v2664_v28  ;;  %v2665_v0 = vadd.f32 1.0, %v3638_v9  ;;  %v2562_v19 = vmul.f32 1.442695, %v2480_v18  ;;  %v2481_v2 = vsub.f32 0.0, %v2283_v51 }
 0x3dc   :  { %v3642_v30 = vpop.eup %3641  ;;  %3659 = vrcp.f32 %v2662_v62  ;;  %v2663_v1 = vadd.f32 1.0, %v3640_v29  ;;  %v2558_v3 = vmul.f32 1.442695, %v2478_v63  ;;  %v2479_v20 = vsub.f32 0.0, %v2275_v54 }
 0x3dd   :  { %v3644_v4 = vpop.eup %3643  ;;  %2788 = vst [vmem:[#allocation2 + $0x30] sm:$0xff] %v3642_v30  ;;  %3661 = vrcp.f32 %v2665_v0  ;;  %v2564_v5 = vmul.f32 1.442695, %v2481_v2 }
 0x3de   :  { %v3646_v7 = vpop.eup %3645  ;;  %2786 = vst [vmem:[#allocation2 + $0x20] sm:$0xff] %v3644_v4  ;;  %3663 = vrcp.f32 %v2663_v1  ;;  %v2560_v8 = vmul.f32 1.442695, %v2479_v20  ;;  %v3471_v6 = vpop.f32.mrb[84].mxu0 }
 0x3df   :  { %v3648_v40 = vpop.eup %3647  ;;  %2789 = vst [vmem:[#allocation2 + $0x38] sm:$0xff] %v3646_v7  ;;  %3665 = vpow2.f32 %v2562_v19  ;;  %v2296_v32 = vadd.f32 %v3471_v6, %v4786_v31  ;;  %v2287_v10 = vpop.f32.mrb[85].mxu0 }
 0x3e0   :  { %v3650_v21 = vpop.eup %3649  ;;  %2787 = vst [vmem:[#allocation2 + $0x28] sm:$0xff] %v3648_v40  ;;  %3667 = vpow2.f32 %v2558_v3  ;;  %v2288_v33 = vadd.f32 %v4786_v31, %v2287_v10  ;;  %v3472_v11 = vpop.f32.mrb[86].mxu0 }
 0x3e1   :  { %v3652_v12 = vpop.eup %3651  ;;  %v2668_v13 = vadd.f32 1.0, %v3650_v21  ;;  %3669 = vpow2.f32 %v2564_v5  ;;  %v2484_v22 = vsub.f32 0.0, %v2296_v32  ;;  %v2299_v34 = vadd.f32 %v3472_v11, %v4786_v31  ;;  %v2290_v14 = vpop.f32.mrb[87].mxu0 }
 0x3e2   :  { %v3654_v41 = vpop.eup %3653  ;;  %v2666_v42 = vadd.f32 1.0, %v3652_v12  ;;  %3671 = vpow2.f32 %v2560_v8  ;;  %v2482_v35 = vsub.f32 0.0, %v2288_v33  ;;  %v2291_v43 = vadd.f32 %v4786_v31, %v2290_v14 }
 0x3e3   :  { %v3656_v23 = vpop.eup %3655  ;;  %3673 = vrcp.f32 %v2668_v13  ;;  %v2669_v44 = vadd.f32 1.0, %v3654_v41  ;;  %v2570_v45 = vmul.f32 1.442695, %v2484_v22  ;;  %v2485_v60 = vsub.f32 0.0, %v2299_v34 }
 0x3e4   :  { %3675 = vrcp.f32 %v2666_v42  ;;  %v2667_v36 = vadd.f32 1.0, %v3656_v23  ;;  %v2566_v24 = vmul.f32 1.442695, %v2482_v35  ;;  %v2483_v47 = vsub.f32 0.0, %v2291_v43 }
 0x3e5   :  { %v3658_v37 = vpop.eup %3657  ;;  %3677 = vrcp.f32 %v2669_v44  ;;  %v2572_v48 = vmul.f32 1.442695, %v2485_v60 }
 0x3e6   :  { %v3660_v15 = vpop.eup %3659  ;;  %2792 = vst [vmem:[#allocation2 + $0x50] sm:$0xff] %v3658_v37  ;;  %3679 = vrcp.f32 %v2667_v36  ;;  %v2568_v50 = vmul.f32 1.442695, %v2483_v47  ;;  %v3475_v25 = vpop.f32.mrb[88].mxu0 }
 0x3e7   :  { %v3662_v38 = vpop.eup %3661  ;;  %2790 = vst [vmem:[#allocation2 + $0x40] sm:$0xff] %v3660_v15  ;;  %3681 = vpow2.f32 %v2570_v45  ;;  %v2312_v52 = vadd.f32 %v3475_v25, %v4786_v31  ;;  %v2303_v16 = vpop.f32.mrb[89].mxu0 }
 0x3e8   :  { %v3664_v53 = vpop.eup %3663  ;;  %2793 = vst [vmem:[#allocation2 + $0x58] sm:$0xff] %v3662_v38  ;;  %3683 = vpow2.f32 %v2566_v24  ;;  %v2304_v39 = vadd.f32 %v4786_v31, %v2303_v16  ;;  %v3476_v26 = vpop.f32.mrb[90].mxu0 }
 0x3e9   :  { %v3666_v55 = vpop.eup %3665  ;;  %2791 = vst [vmem:[#allocation2 + $0x48] sm:$0xff] %v3664_v53  ;;  %3685 = vpow2.f32 %v2572_v48  ;;  %v2488_v56 = vsub.f32 0.0, %v2312_v52  ;;  %v2315_v57 = vadd.f32 %v3476_v26, %v4786_v31  ;;  %v2306_v17 = vpop.f32.mrb[91].mxu0 }
 0x3ea   :  { %v3668_v46 = vpop.eup %3667  ;;  %v2672_v58 = vadd.f32 1.0, %v3666_v55  ;;  %3687 = vpow2.f32 %v2568_v50  ;;  %v2486_v27 = vsub.f32 0.0, %v2304_v39  ;;  %v2307_v49 = vadd.f32 %v4786_v31, %v2306_v17 }
 0x3eb   :  { %v3670_v59 = vpop.eup %3669  ;;  %v2670_v28 = vadd.f32 1.0, %v3668_v46  ;;  %v2489_v18 = vsub.f32 0.0, %v2315_v57  ;;  %v2578_v9 = vmul.f32 1.442695, %v2488_v56 }
 0x3ec   :  { %v3672_v51 = vpop.eup %3671  ;;  %3689 = vrcp.f32 %v2672_v58  ;;  %v2673_v61 = vadd.f32 1.0, %v3670_v59  ;;  %v2487_v62 = vsub.f32 0.0, %v2307_v49  ;;  %v2574_v29 = vmul.f32 1.442695, %v2486_v27 }
 0x3ed   :  { %v3674_v63 = vpop.eup %3673  ;;  %3691 = vrcp.f32 %v2670_v28  ;;  %v2671_v54 = vadd.f32 1.0, %v3672_v51  ;;  %v2580_v19 = vmul.f32 1.442695, %v2489_v18 }
 0x3ee   :  { %v3676_v0 = vpop.eup %3675  ;;  %2796 = vst [vmem:[#allocation2 + $0x70] sm:$0xff] %v3674_v63  ;;  %3693 = vrcp.f32 %v2673_v61  ;;  %v3479_v2 = vpop.f32.mrb[92].mxu0  ;;  %v2576_v1 = vmul.f32 1.442695, %v2487_v62 }
 0x3ef   :  { %v3678_v30 = vpop.eup %3677  ;;  %2794 = vst [vmem:[#allocation2 + $0x60] sm:$0xff] %v3676_v0  ;;  %3695 = vrcp.f32 %v2671_v54  ;;  %v2328_v3 = vadd.f32 %v3479_v2, %v4786_v31  ;;  %v2319_v20 = vpop.f32.mrb[93].mxu0 }
 0x3f0   :  { %v3680_v4 = vpop.eup %3679  ;;  %2797 = vst [vmem:[#allocation2 + $0x78] sm:$0xff] %v3678_v30  ;;  %3697 = vpow2.f32 %v2578_v9  ;;  %v2320_v5 = vadd.f32 %v4786_v31, %v2319_v20  ;;  %v3480_v7 = vpop.f32.mrb[94].mxu0 }
 0x3f1   :  { %v3682_v8 = vpop.eup %3681  ;;  %2795 = vst [vmem:[#allocation2 + $0x68] sm:$0xff] %v3680_v4  ;;  %3699 = vpow2.f32 %v2574_v29  ;;  %v2492_v6 = vsub.f32 0.0, %v2328_v3  ;;  %v2331_v40 = vadd.f32 %v3480_v7, %v4786_v31  ;;  %v2322_v32 = vpop.f32.mrb[95].mxu0 }
 0x3f2   :  { %v3684_v10 = vpop.eup %3683  ;;  %v2676_v21 = vadd.f32 1.0, %v3682_v8  ;;  %3701 = vpow2.f32 %v2580_v19  ;;  %v2490_v33 = vsub.f32 0.0, %v2320_v5  ;;  %v2323_v11 = vadd.f32 %v4786_v31, %v2322_v32 }
 0x3f3   :  { %v3686_v12 = vpop.eup %3685  ;;  %v2674_v13 = vadd.f32 1.0, %v3684_v10  ;;  %3703 = vpow2.f32 %v2576_v1  ;;  %v2493_v22 = vsub.f32 0.0, %v2331_v40  ;;  %v2586_v41 = vmul.f32 1.442695, %v2492_v6 }
 0x3f4   :  { %v3688_v34 = vpop.eup %3687  ;;  %3705 = vrcp.f32 %v2676_v21  ;;  %v2677_v14 = vadd.f32 1.0, %v3686_v12  ;;  %v2491_v42 = vsub.f32 0.0, %v2323_v11  ;;  %v2582_v43 = vmul.f32 1.442695, %v2490_v33 }
 0x3f5   :  { %3707 = vrcp.f32 %v2674_v13  ;;  %v2675_v35 = vadd.f32 1.0, %v3688_v34  ;;  %v2588_v44 = vmul.f32 1.442695, %v2493_v22 }
 0x3f6   :  { %v3690_v23 = vpop.eup %3689  ;;  %3709 = vrcp.f32 %v2677_v14  ;;  %v2584_v60 = vmul.f32 1.442695, %v2491_v42 }
 0x3f7   :  { %v3692_v45 = vpop.eup %3691  ;;  %2800 = vst [vmem:[#allocation2 + $0x90] sm:$0xff] %v3690_v23  ;;  %3711 = vrcp.f32 %v2675_v35 }
 0x3f8   :  { %v3694_v36 = vpop.eup %3693  ;;  %2798 = vst [vmem:[#allocation2 + $0x80] sm:$0xff] %v3692_v45  ;;  %3713 = vpow2.f32 %v2586_v41  ;;  %v3483_v24 = vpop.f32.mrb[96].mxu0 }
 0x3f9   :  { %v3696_v47 = vpop.eup %3695  ;;  %2801 = vst [vmem:[#allocation2 + $0x98] sm:$0xff] %v3694_v36  ;;  %3715 = vpow2.f32 %v2582_v43  ;;  %v2344_v37 = vadd.f32 %v3483_v24, %v4786_v31  ;;  %v2335_v48 = vpop.f32.mrb[97].mxu0 }
 0x3fa   :  { %v3698_v15 = vpop.eup %3697  ;;  %2799 = vst [vmem:[#allocation2 + $0x88] sm:$0xff] %v3696_v47  ;;  %3717 = vpow2.f32 %v2588_v44  ;;  %v2336_v50 = vadd.f32 %v4786_v31, %v2335_v48  ;;  %v3484_v25 = vpop.f32.mrb[98].mxu0 }
 0x3fb   :  { %v3700_v38 = vpop.eup %3699  ;;  %v2680_v52 = vadd.f32 1.0, %v3698_v15  ;;  %3719 = vpow2.f32 %v2584_v60  ;;  %v2496_v16 = vsub.f32 0.0, %v2344_v37  ;;  %v2347_v53 = vadd.f32 %v3484_v25, %v4786_v31  ;;  %v2338_v39 = vpop.f32.mrb[99].mxu0 }
 0x3fc   :  { %v3702_v26 = vpop.eup %3701  ;;  %v2678_v55 = vadd.f32 1.0, %v3700_v38  ;;  %v2494_v56 = vsub.f32 0.0, %v2336_v50  ;;  %v2339_v57 = vadd.f32 %v4786_v31, %v2338_v39 }
 0x3fd   :  { %v3704_v17 = vpop.eup %3703  ;;  %3721 = vrcp.f32 %v2680_v52  ;;  %v2681_v46 = vadd.f32 1.0, %v3702_v26  ;;  %v2594_v58 = vmul.f32 1.442695, %v2496_v16  ;;  %v2497_v27 = vsub.f32 0.0, %v2347_v53 }
 0x3fe   :  { %v3706_v49 = vpop.eup %3705  ;;  %3723 = vrcp.f32 %v2678_v55  ;;  %v2679_v59 = vadd.f32 1.0, %v3704_v17  ;;  %v2590_v28 = vmul.f32 1.442695, %v2494_v56  ;;  %v2495_v18 = vsub.f32 0.0, %v2339_v57 }
 0x3ff   :  { %v3708_v51 = vpop.eup %3707  ;;  %2804 = vst [vmem:[#allocation2 + $0xb0] sm:$0xff] %v3706_v49  ;;  %3725 = vrcp.f32 %v2681_v46  ;;  %v2596_v61 = vmul.f32 1.442695, %v2497_v27 }
 0x400   :  { %v3710_v9 = vpop.eup %3709  ;;  %2802 = vst [vmem:[#allocation2 + $0xa0] sm:$0xff] %v3708_v51  ;;  %3727 = vrcp.f32 %v2679_v59  ;;  %v2592_v62 = vmul.f32 1.442695, %v2495_v18  ;;  %v3487_v63 = vpop.f32.mrb[100].mxu0 }
 0x401   :  { %v3712_v54 = vpop.eup %3711  ;;  %2805 = vst [vmem:[#allocation2 + $0xb8] sm:$0xff] %v3710_v9  ;;  %3729 = vpow2.f32 %v2594_v58  ;;  %v2360_v29 = vadd.f32 %v3487_v63, %v4786_v31  ;;  %v2351_v0 = vpop.f32.mrb[101].mxu0 }
 0x402   :  { %v3714_v19 = vpop.eup %3713  ;;  %2803 = vst [vmem:[#allocation2 + $0xa8] sm:$0xff] %v3712_v54  ;;  %3731 = vpow2.f32 %v2590_v28  ;;  %v2352_v2 = vadd.f32 %v4786_v31, %v2351_v0  ;;  %v3488_v30 = vpop.f32.mrb[102].mxu0 }
 0x403   :  { %v3716_v1 = vpop.eup %3715  ;;  %v2684_v3 = vadd.f32 1.0, %v3714_v19  ;;  %3733 = vpow2.f32 %v2596_v61  ;;  %v2500_v20 = vsub.f32 0.0, %v2360_v29  ;;  %v2363_v4 = vadd.f32 %v3488_v30, %v4786_v31  ;;  %v2354_v5 = vpop.f32.mrb[103].mxu0 }
 0x404   :  { %v3718_v7 = vpop.eup %3717  ;;  %v2682_v8 = vadd.f32 1.0, %v3716_v1  ;;  %3735 = vpow2.f32 %v2592_v62  ;;  %v2498_v6 = vsub.f32 0.0, %v2352_v2  ;;  %v2355_v40 = vadd.f32 %v4786_v31, %v2354_v5 }
 0x405   :  { %v3720_v32 = vpop.eup %3719  ;;  %3737 = vrcp.f32 %v2684_v3  ;;  %v2685_v10 = vadd.f32 1.0, %v3718_v7  ;;  %v2602_v21 = vmul.f32 1.442695, %v2500_v20  ;;  %v2501_v33 = vsub.f32 0.0, %v2363_v4 }
 0x406   :  { %3739 = vrcp.f32 %v2682_v8  ;;  %v2683_v11 = vadd.f32 1.0, %v3720_v32  ;;  %v2598_v12 = vmul.f32 1.442695, %v2498_v6  ;;  %v2499_v13 = vsub.f32 0.0, %v2355_v40 }
 0x407   :  { %v3722_v22 = vpop.eup %3721  ;;  %3741 = vrcp.f32 %v2685_v10  ;;  %v2604_v34 = vmul.f32 1.442695, %v2501_v33 }
 0x408   :  { %v3724_v14 = vpop.eup %3723  ;;  %2808 = vst [vmem:[#allocation2 + $0xd0] sm:$0xff] %v3722_v22  ;;  %3743 = vrcp.f32 %v2683_v11  ;;  %v2600_v41 = vmul.f32 1.442695, %v2499_v13  ;;  %v3491_v42 = vpop.f32.mrb[104].mxu0 }
 0x409   :  { %v3726_v35 = vpop.eup %3725  ;;  %2806 = vst [vmem:[#allocation2 + $0xc0] sm:$0xff] %v3724_v14  ;;  %3745 = vpow2.f32 %v2602_v21  ;;  %v2376_v43 = vadd.f32 %v3491_v42, %v4786_v31  ;;  %v2367_v23 = vpop.f32.mrb[105].mxu0 }
 0x40a   :  { %v3728_v44 = vpop.eup %3727  ;;  %2809 = vst [vmem:[#allocation2 + $0xd8] sm:$0xff] %v3726_v35  ;;  %3747 = vpow2.f32 %v2598_v12  ;;  %v2368_v45 = vadd.f32 %v4786_v31, %v2367_v23  ;;  %v3492_v60 = vpop.f32.mrb[106].mxu0 }
 0x40b   :  { %v3730_v36 = vpop.eup %3729  ;;  %2807 = vst [vmem:[#allocation2 + $0xc8] sm:$0xff] %v3728_v44  ;;  %3749 = vpow2.f32 %v2604_v34  ;;  %v2504_v24 = vsub.f32 0.0, %v2376_v43  ;;  %v2379_v47 = vadd.f32 %v3492_v60, %v4786_v31  ;;  %v2370_v37 = vpop.f32.mrb[107].mxu0 }
 0x40c   :  { %v3732_v48 = vpop.eup %3731  ;;  %v2688_v15 = vadd.f32 1.0, %v3730_v36  ;;  %3751 = vpow2.f32 %v2600_v41  ;;  %v2502_v50 = vsub.f32 0.0, %v2368_v45  ;;  %v2371_v25 = vadd.f32 %v4786_v31, %v2370_v37 }
 0x40d   :  { %v3734_v38 = vpop.eup %3733  ;;  %v2686_v52 = vadd.f32 1.0, %v3732_v48  ;;  %v2505_v16 = vsub.f32 0.0, %v2379_v47  ;;  %v2610_v26 = vmul.f32 1.442695, %v2504_v24 }
 0x40e   :  { %v3736_v53 = vpop.eup %3735  ;;  %3753 = vrcp.f32 %v2688_v15  ;;  %v2689_v39 = vadd.f32 1.0, %v3734_v38  ;;  %v2503_v55 = vsub.f32 0.0, %v2371_v25  ;;  %v2606_v17 = vmul.f32 1.442695, %v2502_v50 }
 0x40f   :  { %v3738_v56 = vpop.eup %3737  ;;  %3755 = vrcp.f32 %v2686_v52  ;;  %v2687_v57 = vadd.f32 1.0, %v3736_v53  ;;  %v2612_v58 = vmul.f32 1.442695, %v2505_v16 }
 0x410   :  { %v3740_v46 = vpop.eup %3739  ;;  %2812 = vst [vmem:[#allocation2 + $0xf0] sm:$0xff] %v3738_v56  ;;  %3757 = vrcp.f32 %v2689_v39  ;;  %v3495_v27 = vpop.f32.mrb[108].mxu0  ;;  %v2608_v59 = vmul.f32 1.442695, %v2503_v55 }
 0x411   :  { %v3742_v49 = vpop.eup %3741  ;;  %2810 = vst [vmem:[#allocation2 + $0xe0] sm:$0xff] %v3740_v46  ;;  %3759 = vrcp.f32 %v2687_v57  ;;  %v2392_v28 = vadd.f32 %v3495_v27, %v4786_v31  ;;  %v2383_v18 = vpop.f32.mrb[109].mxu0 }
 0x412   :  { %v3744_v51 = vpop.eup %3743  ;;  %2813 = vst [vmem:[#allocation2 + $0xf8] sm:$0xff] %v3742_v49  ;;  %3761 = vpow2.f32 %v2610_v26  ;;  %v2384_v61 = vadd.f32 %v4786_v31, %v2383_v18  ;;  %v3496_v9 = vpop.f32.mrb[110].mxu0 }
 0x413   :  { %v3746_v62 = vpop.eup %3745  ;;  %2811 = vst [vmem:[#allocation2 + $0xe8] sm:$0xff] %v3744_v51  ;;  %3763 = vpow2.f32 %v2606_v17  ;;  %v2508_v63 = vsub.f32 0.0, %v2392_v28  ;;  %v2395_v54 = vadd.f32 %v3496_v9, %v4786_v31  ;;  %v2386_v29 = vpop.f32.mrb[111].mxu0 }
 0x414   :  { %v3748_v0 = vpop.eup %3747  ;;  %v2692_v19 = vadd.f32 1.0, %v3746_v62  ;;  %3765 = vpow2.f32 %v2612_v58  ;;  %v2506_v2 = vsub.f32 0.0, %v2384_v61  ;;  %v2387_v30 = vadd.f32 %v4786_v31, %v2386_v29 }
 0x415   :  { %v3750_v1 = vpop.eup %3749  ;;  %v2690_v3 = vadd.f32 1.0, %v3748_v0  ;;  %3767 = vpow2.f32 %v2608_v59  ;;  %v2509_v20 = vsub.f32 0.0, %v2395_v54  ;;  %v2618_v7 = vmul.f32 1.442695, %v2508_v63 }
 0x416   :  { %v3752_v4 = vpop.eup %3751  ;;  %3769 = vrcp.f32 %v2692_v19  ;;  %v2693_v5 = vadd.f32 1.0, %v3750_v1  ;;  %v2507_v8 = vsub.f32 0.0, %v2387_v30  ;;  %v2614_v40 = vmul.f32 1.442695, %v2506_v2 }
 0x417   :  { %3771 = vrcp.f32 %v2690_v3  ;;  %v2691_v6 = vadd.f32 1.0, %v3752_v4  ;;  %v2620_v10 = vmul.f32 1.442695, %v2509_v20 }
 0x418   :  { %v3754_v32 = vpop.eup %3753  ;;  %3773 = vrcp.f32 %v2693_v5  ;;  %v3499_v21 = vpop.f32.mrb[112].mxu0  ;;  %v2616_v11 = vmul.f32 1.442695, %v2507_v8 }
 0x419   :  { %v3756_v33 = vpop.eup %3755  ;;  %2816 = vst [vmem:[#allocation2 + $0x110] sm:$0xff] %v3754_v32  ;;  %3775 = vrcp.f32 %v2691_v6  ;;  %v2408_v12 = vadd.f32 %v3499_v21, %v4786_v31  ;;  %v2399_v13 = vpop.f32.mrb[113].mxu0 }
 0x41a   :  { %v3758_v22 = vpop.eup %3757  ;;  %2814 = vst [vmem:[#allocation2 + $0x100] sm:$0xff] %v3756_v33  ;;  %3777 = vpow2.f32 %v2618_v7  ;;  %v2400_v34 = vadd.f32 %v4786_v31, %v2399_v13  ;;  %v3500_v14 = vpop.f32.mrb[114].mxu0 }
 0x41b   :  { %v3760_v41 = vpop.eup %3759  ;;  %2817 = vst [vmem:[#allocation2 + $0x118] sm:$0xff] %v3758_v22  ;;  %3779 = vpow2.f32 %v2614_v40  ;;  %v2512_v42 = vsub.f32 0.0, %v2408_v12  ;;  %v2411_v35 = vadd.f32 %v3500_v14, %v4786_v31  ;;  %v2402_v43 = vpop.f32.mrb[115].mxu0 }
 0x41c   :  { %v3762_v23 = vpop.eup %3761  ;;  %2815 = vst [vmem:[#allocation2 + $0x108] sm:$0xff] %v3760_v41  ;;  %3781 = vpow2.f32 %v2620_v10  ;;  %v2510_v44 = vsub.f32 0.0, %v2400_v34  ;;  %v2403_v45 = vadd.f32 %v4786_v31, %v2402_v43 }
 0x41d   :  { %v3764_v60 = vpop.eup %3763  ;;  %v2696_v36 = vadd.f32 1.0, %v3762_v23  ;;  %3783 = vpow2.f32 %v2616_v11  ;;  %v2513_v24 = vsub.f32 0.0, %v2411_v35  ;;  %v2626_v25 = vmul.f32 1.442695, %v2512_v42  ;;  %v3865_v11 = vld [vmem:[%s4871_s10] ss:$0 sm:$0xff] }
 0x41e   :  { %v3766_v47 = vpop.eup %3765  ;;  %v2694_v37 = vadd.f32 1.0, %v3764_v60  ;;  %v2511_v48 = vsub.f32 0.0, %v2403_v45  ;;  %v2622_v16 = vmul.f32 1.442695, %v2510_v44  ;;  %s3891_s10 = smov [#allocation2]  }
 0x41f   :  { %v3768_v15 = vpop.eup %3767  ;;  %3785 = vrcp.f32 %v2696_v36  ;;  %v2697_v50 = vadd.f32 1.0, %v3766_v47  ;;  %v2628_v26 = vmul.f32 1.442695, %v2513_v24  ;;  %s2851_s23 = sshll.u32 %s3891_s10, 4  ;;  %s2852_s23 = int_to_ptr.vmem [resolvable:$true] %s2851_s23 }
 0x420   :  { %v3770_v38 = vpop.eup %3769  ;;  %3787 = vrcp.f32 %v2694_v37  ;;  %v2695_v52 = vadd.f32 1.0, %v3768_v15  ;;  %v3503_v53 = vpop.f32.mrb[116].mxu0  ;;  %v2624_v17 = vmul.f32 1.442695, %v2511_v48  ;;  %s3866_s24 = scalar_lea.vmem %s2852_s23, 8192  ;;  %p3871_p1 = scmp.lt.s32.totalorder %s2852_s23, %s2852_s23 }
 0x421   :  { %v3772_v39 = vpop.eup %3771  ;;  %2820 = vst [vmem:[#allocation2 + $0x130] sm:$0xff] %v3770_v38  ;;  %3789 = vrcp.f32 %v2697_v50  ;;  %v2424_v55 = vadd.f32 %v3503_v53, %v4786_v31  ;;  %v2415_v56 = vpop.f32.mrb[117].mxu0  ;;  %p3867_p0 = scmp.ne.s32.totalorder %s2852_s23, %s3866_s24  ;;  %p3872_p2 = scmp.lt.s32.totalorder %s3866_s24, %s3866_s24 }
 0x422   :  { %v3774_v57 = vpop.eup %3773  ;;  %2818 = vst [vmem:[#allocation2 + $0x120] sm:$0xff] %v3772_v39  ;;  %3791 = vrcp.f32 %v2695_v52  ;;  %v2416_v46 = vadd.f32 %v4786_v31, %v2415_v56  ;;  %v3504_v58 = vpop.f32.mrb[118].mxu0 }
 0x423   :  { %v3776_v27 = vpop.eup %3775  ;;  %2821 = vst [vmem:[#allocation2 + $0x138] sm:$0xff] %v3774_v57  ;;  %3793 = vpow2.f32 %v2626_v25  ;;  %v2516_v49 = vsub.f32 0.0, %v2424_v55  ;;  %v2427_v59 = vadd.f32 %v3504_v58, %v4786_v31  ;;  %v2418_v28 = vpop.f32.mrb[119].mxu0  ;;  %p3873_p3 = por %p3872_p2, %p3871_p1 }
 0x424   :  { %v3778_v18 = vpop.eup %3777  ;;  %2819 = vst [vmem:[#allocation2 + $0x128] sm:$0xff] %v3776_v27  ;;  %3795 = vpow2.f32 %v2622_v16  ;;  %v2514_v51 = vsub.f32 0.0, %v2416_v46  ;;  %v2419_v61 = vadd.f32 %v4786_v31, %v2418_v28 }
 0x425   :  { %v3780_v9 = vpop.eup %3779  ;;  %v2700_v62 = vadd.f32 1.0, %v3778_v18  ;;  %3797 = vpow2.f32 %v2628_v26  ;;  %v2517_v63 = vsub.f32 0.0, %v2427_v59  ;;  %v2634_v30 = vmul.f32 1.442695, %v2516_v49  ;;  %p3874_p4 = pnand %p3873_p3, %p3867_p0 }
 0x426   :  { %v3782_v54 = vpop.eup %3781  ;;  %v2698_v29 = vadd.f32 1.0, %v3780_v9  ;;  %3799 = vpow2.f32 %v2624_v17  ;;  %v2515_v0 = vsub.f32 0.0, %v2419_v61  ;;  %v2630_v3 = vmul.f32 1.442695, %v2514_v51 }
 0x427   :  { %v3784_v19 = vpop.eup %3783  ;;  %3801 = vrcp.f32 %v2700_v62  ;;  %v2701_v2 = vadd.f32 1.0, %v3782_v54  ;;  %v2636_v5 = vmul.f32 1.442695, %v2517_v63 }
 0x428   :  { %3803 = vrcp.f32 %v2698_v29  ;;  %v2699_v1 = vadd.f32 1.0, %v3784_v19  ;;  %v3507_v20 = vpop.f32.mrb[120].mxu0  ;;  %v2632_v40 = vmul.f32 1.442695, %v2515_v0 }
 0x429   :  { %v3786_v4 = vpop.eup %3785  ;;  %3805 = vrcp.f32 %v2701_v2  ;;  %v2440_v7 = vadd.f32 %v3507_v20, %v4786_v31  ;;  %v2431_v8 = vpop.f32.mrb[121].mxu0 }
 0x42a   :  { %v3788_v6 = vpop.eup %3787  ;;  %2824 = vst [vmem:[#allocation2 + $0x150] sm:$0xff] %v3786_v4  ;;  %3807 = vrcp.f32 %v2699_v1  ;;  %v2432_v32 = vadd.f32 %v4786_v31, %v2431_v8  ;;  %v3508_v10 = vpop.f32.mrb[122].mxu0 }
 0x42b   :  { %v3790_v21 = vpop.eup %3789  ;;  %2822 = vst [vmem:[#allocation2 + $0x140] sm:$0xff] %v3788_v6  ;;  %3809 = vpow2.f32 %v2634_v30  ;;  %v2520_v33 = vsub.f32 0.0, %v2440_v7  ;;  %v2443_v12 = vadd.f32 %v3865_v11, %v3508_v10  ;;  %v2434_v13 = vpop.f32.mrb[123].mxu0 }
 0x42c   :  { %v3792_v22 = vpop.eup %3791  ;;  %2825 = vst [vmem:[#allocation2 + $0x158] sm:$0xff] %v3790_v21  ;;  %3811 = vpow2.f32 %v2630_v3  ;;  %v2518_v34 = vsub.f32 0.0, %v2432_v32  ;;  %v2435_v14 = vadd.f32 %v3865_v11, %v2434_v13 }
 0x42d   :  { %v3794_v41 = vpop.eup %3793  ;;  %2823 = vst [vmem:[#allocation2 + $0x148] sm:$0xff] %v3792_v22  ;;  %3813 = vpow2.f32 %v2636_v5  ;;  %v2642_v31 = vmul.f32 1.442695, %v2520_v33  ;;  %v2521_v42 = vsub.f32 0.0, %v2443_v12 }
 0x42e   :  { %v3796_v35 = vpop.eup %3795  ;;  %v2704_v43 = vadd.f32 1.0, %v3794_v41  ;;  %3815 = vpow2.f32 %v2632_v40  ;;  %v2519_v23 = vsub.f32 0.0, %v2435_v14  ;;  %v2638_v24 = vmul.f32 1.442695, %v2518_v34 }
 0x42f   :  { %v3798_v44 = vpop.eup %3797  ;;  %v2702_v45 = vadd.f32 1.0, %v3796_v35  ;;  %3817 = vpow2.f32 %v2642_v31  ;;  %v2644_v15 = vmul.f32 1.442695, %v2521_v42 }
 0x430   :  { %v3800_v60 = vpop.eup %3799  ;;  %3819 = vrcp.f32 %v2704_v43  ;;  %v2705_v36 = vadd.f32 1.0, %v3798_v44  ;;  %v3511_v47 = vpop.f32.mrb[124].mxu0  ;;  %v2640_v52 = vmul.f32 1.442695, %v2519_v23 }
 0x431   :  { %v3802_v37 = vpop.eup %3801  ;;  %3821 = vrcp.f32 %v2702_v45  ;;  %v2703_v48 = vadd.f32 1.0, %v3800_v60  ;;  %v2456_v50 = vadd.f32 %v3865_v11, %v3511_v47  ;;  %v2447_v25 = vpop.f32.mrb[125].mxu0 }
 0x432   :  { %v3804_v38 = vpop.eup %3803  ;;  %2828 = vst [vmem:[#allocation2 + $0x170] sm:$0xff] %v3802_v37  ;;  %3823 = vrcp.f32 %v2705_v36  ;;  %v2448_v16 = vadd.f32 %v3865_v11, %v2447_v25  ;;  %v3512_v53 = vpop.f32.mrb[126].mxu0 }
 0x433   :  { %v3806_v39 = vpop.eup %3805  ;;  %2826 = vst [vmem:[#allocation2 + $0x160] sm:$0xff] %v3804_v38  ;;  %3825 = vrcp.f32 %v2703_v48  ;;  %v2524_v26 = vsub.f32 0.0, %v2456_v50  ;;  %v2459_v55 = vadd.f32 %v3865_v11, %v3512_v53  ;;  %v2450_v56 = vpop.f32.mrb[127].mxu0 }
 0x434   :  { %v3808_v57 = vpop.eup %3807  ;;  %2829 = vst [vmem:[#allocation2 + $0x178] sm:$0xff] %v3806_v39  ;;  %3827 = vpow2.f32 %v2638_v24  ;;  %v2451_v17 = vadd.f32 %v3865_v11, %v2450_v56  ;;  %v2522_v27 = vsub.f32 0.0, %v2448_v16 }
 0x435   :  { %v3810_v46 = vpop.eup %3809  ;;  %2827 = vst [vmem:[#allocation2 + $0x168] sm:$0xff] %v3808_v57  ;;  %3829 = vpow2.f32 %v2644_v15  ;;  %v2650_v58 = vmul.f32 1.442695, %v2524_v26  ;;  %v2525_v28 = vsub.f32 0.0, %v2459_v55 }
 0x436   :  { %v3812_v49 = vpop.eup %3811  ;;  %v2708_v59 = vadd.f32 1.0, %v3810_v46  ;;  %3831 = vpow2.f32 %v2640_v52  ;;  %v2523_v61 = vsub.f32 0.0, %v2451_v17  ;;  %v2646_v29 = vmul.f32 1.442695, %v2522_v27 }
 0x437   :  { %v3814_v18 = vpop.eup %3813  ;;  %v2706_v51 = vadd.f32 1.0, %v3812_v49  ;;  %3833 = vpow2.f32 %v2650_v58  ;;  %v2652_v2 = vmul.f32 1.442695, %v2525_v28 }
 0x438   :  { %v3816_v9 = vpop.eup %3815  ;;  %3835 = vrcp.f32 %v2708_v59  ;;  %v2709_v62 = vadd.f32 1.0, %v3814_v18  ;;  %v2648_v1 = vmul.f32 1.442695, %v2523_v61 }
 0x439   :  { %v3818_v63 = vpop.eup %3817  ;;  %3837 = vrcp.f32 %v2706_v51  ;;  %v2707_v54 = vadd.f32 1.0, %v3816_v9 }
 0x43a   :  { %v3820_v0 = vpop.eup %3819  ;;  %3839 = vrcp.f32 %v2709_v62  ;;  %v2712_v19 = vadd.f32 1.0, %v3818_v63 }
 0x43b   :  { %v3822_v30 = vpop.eup %3821  ;;  %2832 = vst [vmem:[#allocation2 + $0x190] sm:$0xff] %v3820_v0  ;;  %3841 = vrcp.f32 %v2707_v54 }
 0x43c   :  { %v3824_v3 = vpop.eup %3823  ;;  %2830 = vst [vmem:[#allocation2 + $0x180] sm:$0xff] %v3822_v30  ;;  %3843 = vrcp.f32 %v2712_v19 }
 0x43d   :  { %v3826_v20 = vpop.eup %3825  ;;  %2833 = vst [vmem:[#allocation2 + $0x198] sm:$0xff] %v3824_v3  ;;  %3845 = vpow2.f32 %v2646_v29 }
 0x43e   :  { %v3828_v4 = vpop.eup %3827  ;;  %2831 = vst [vmem:[#allocation2 + $0x188] sm:$0xff] %v3826_v20  ;;  %3847 = vpow2.f32 %v2652_v2 }
 0x43f   :  { %v3830_v5 = vpop.eup %3829  ;;  %v2710_v7 = vadd.f32 1.0, %v3828_v4  ;;  %3849 = vpow2.f32 %v2648_v1 }
 0x440   :  { %v3832_v8 = vpop.eup %3831  ;;  %v2713_v6 = vadd.f32 1.0, %v3830_v5 }
 0x441   :  { %v3834_v40 = vpop.eup %3833  ;;  %3851 = vrcp.f32 %v2710_v7  ;;  %v2711_v32 = vadd.f32 1.0, %v3832_v8 }
 0x442   :  { %v3836_v10 = vpop.eup %3835  ;;  %3853 = vrcp.f32 %v2713_v6  ;;  %v2716_v21 = vadd.f32 1.0, %v3834_v40 }
 0x443   :  { %v3838_v33 = vpop.eup %3837  ;;  %2836 = vst [vmem:[#allocation2 + $0x1b0] sm:$0xff] %v3836_v10  ;;  %3855 = vrcp.f32 %v2711_v32 }
 0x444   :  { %v3840_v11 = vpop.eup %3839  ;;  %2834 = vst [vmem:[#allocation2 + $0x1a0] sm:$0xff] %v3838_v33  ;;  %3857 = vrcp.f32 %v2716_v21 }
 0x445   :  { %v3842_v12 = vpop.eup %3841  ;;  %2837 = vst [vmem:[#allocation2 + $0x1b8] sm:$0xff] %v3840_v11 }
 0x446   :  { %v3844_v13 = vpop.eup %3843  ;;  %2835 = vst [vmem:[#allocation2 + $0x1a8] sm:$0xff] %v3842_v12 }
 0x447   :  { %v3846_v22 = vpop.eup %3845  ;;  %2840 = vst [vmem:[#allocation2 + $0x1d0] sm:$0xff] %v3844_v13 }
 0x448   :  { %v3848_v34 = vpop.eup %3847  ;;  %v2714_v14 = vadd.f32 1.0, %v3846_v22 }
 0x449   :  { %v3850_v41 = vpop.eup %3849  ;;  %v2717_v31 = vadd.f32 1.0, %v3848_v34 }
 0x44a   :  { %3859 = vrcp.f32 %v2714_v14  ;;  %v2715_v42 = vadd.f32 1.0, %v3850_v41 }
 0x44b   :  { %v3852_v35 = vpop.eup %3851  ;;  %3861 = vrcp.f32 %v2717_v31 }
 0x44c   :  { %v3854_v43 = vpop.eup %3853  ;;  %2838 = vst [vmem:[#allocation2 + $0x1c0] sm:$0xff] %v3852_v35  ;;  %3863 = vrcp.f32 %v2715_v42 }
 0x44d   :  { %v3856_v23 = vpop.eup %3855  ;;  %2841 = vst [vmem:[#allocation2 + $0x1d8] sm:$0xff] %v3854_v43 }
 0x44e   :  { %v3858_v44 = vpop.eup %3857  ;;  %2839 = vst [vmem:[#allocation2 + $0x1c8] sm:$0xff] %v3856_v23 }
 0x44f   :  { %2844 = vst [vmem:[#allocation2 + $0x1f0] sm:$0xff] %v3858_v44 }
 0x454   :  { %v3860_v45 = vpop.eup %3859 }
 0x455   :  { %v3862_v60 = vpop.eup %3861  ;;  %2842 = vst [vmem:[#allocation2 + $0x1e0] sm:$0xff] %v3860_v45 }
 0x456   :  { %v3864_v36 = vpop.eup %3863  ;;  %2845 = vst [vmem:[#allocation2 + $0x1f8] sm:$0xff] %v3862_v60 }
 0x457   :  { %2843 = vst [vmem:[#allocation2 + $0x1e8] sm:$0xff] %v3864_v36 }
 0x458   :  { %3877 = shalt.err (!%p3874_p4)
}
 0x459   :  { %s3878_s26 = scalar_lea.hbm %s4872_s11, 8192 }
 0x45a   :  { %p3879_p5 = scmp.ne.s32.totalorder %s4872_s11, %s3878_s26  ;;  %p3882_p6 = scmp.lt.u32.totalorder %s3878_s26, %s4872_s11 }
 0x45c   :  { %p3884_p7 = pnand %p3882_p6, %p3879_p5 }
 0x45e   :  { %3887 = shalt.err (!%p3884_p7)
}
 0x45f   :  { %s3892_s30 = smov 128   ;;  %s3893_s12 = smov 8  }
 0x460   :  { %2857 = dma.vmem_to_hbm [thread:$0]  %s2852_s23, 8192, %s4872_s11, [#allocation3], %s3892_s30, %s3892_s30, %s3893_s12  }
 0x461   :  { %3888 = dma.done.wait [#allocation3], 8192  }
 0x462   :  { %3889 = vsyncadd [#allocation3], 4294959104 }
 0x463   :  { %2861 = vsyncpa [#allocation3], 1 }

</bundles_post_ra>
